<compile_context>
chip_gen: v6e
topology: v6e:2x2x1
jax: 0.10.0
libtpu: 0.0.40
codegen_flags: <defaults>
</compile_context>

<pallas_src>
import numpy as np
import jax
import jax.numpy as jnp
from jax import lax
from jax.experimental import pallas as pl
from jax.experimental.pallas import tpu as pltpu


# ----------------------------------------------------------------------------
# Fused 3x3 conv (padding=1) + folded BatchNorm + ReLU, one batch element per grid step
# ----------------------------------------------------------------------------
def conv_bn_relu_kernel(x_ref, w_ref, scale_ref, bias_ref, o_ref, xp_ref):
    # x_ref    : (1, H, W, Cin)   f32 input tile (unpadded)
    # w_ref    : (9*Cin, Cp)      bf16 im2col-packed weights (Cp = Cout padded to 128)
    # scale_ref: (1, Cp)          f32 folded BN scale
    # bias_ref : (1, Cp)          f32 folded BN bias (includes conv bias)
    # o_ref    : (1, H, W, Cp)    f32 output tile (lane-dense, channel-padded)
    # xp_ref   : (H+2, W+2, Cin)  f32 VMEM scratch for the halo-padded input
    H, W, Cp = o_ref.shape[1], o_ref.shape[2], o_ref.shape[3]
    Cin = x_ref.shape[3]

    # Build the zero halo in VMEM (no host-side pad / extra HBM pass).
    xp_ref[...] = jnp.zeros_like(xp_ref)
    xp_ref[1:H + 1, 1:W + 1, :] = x_ref[0]
    xp = xp_ref[...]

    # im2col: (H*W, 9*Cin) patch matrix, tap order (dy, dx, cin) matching the packed weight.
    parts = [
        xp[dy:dy + H, dx:dx + W, :].reshape(H * W, Cin)
        for dy in range(3) for dx in range(3)
    ]
    patches = jnp.concatenate(parts, axis=1).astype(jnp.bfloat16)       # (H*W, 9*Cin)

    # Single MXU matmul, f32 accumulation.
    acc = jnp.dot(patches, w_ref[...],
                  preferred_element_type=jnp.float32)                   # (H*W, Cp)

    # Folded BN + ReLU epilogue in f32 on the VPU.
    out = jnp.maximum(acc * scale_ref[...] + bias_ref[...], 0.0)
    o_ref[0] = out.reshape(H, W, Cp)


def conv_bn_relu(x_nchw, w_hwio, scale, bias):
    """PyTorch-equivalent forward: NCHW in -> NCHW out."""
    N, Cin, H, W = x_nchw.shape
    Cout = w_hwio.shape[-1]
    Cp = ((Cout + 127) // 128) * 128                      # lane-dense channel padding
    K9 = 9 * Cin

    x = jnp.transpose(x_nchw, (0, 2, 3, 1))               # NCHW -> NHWC

    # Host-side one-time packing: im2col weight layout, channel padding, bf16 cast.
    w_packed = (jnp.zeros((K9, Cp), jnp.float32)
                .at[:, :Cout].set(w_hwio.reshape(K9, Cout))
                .astype(jnp.bfloat16))
    scale_p = jnp.zeros((1, Cp), jnp.float32).at[0, :Cout].set(scale)
    bias_p = jnp.zeros((1, Cp), jnp.float32).at[0, :Cout].set(bias)

    out = pl.pallas_call(
        conv_bn_relu_kernel,
        out_shape=jax.ShapeDtypeStruct((N, H, W, Cp), jnp.float32),
        grid=(N,),
        in_specs=[
            pl.BlockSpec((1, H, W, Cin), lambda n: (n, 0, 0, 0)),
            pl.BlockSpec((K9, Cp), lambda n: (0, 0)),
            pl.BlockSpec((1, Cp), lambda n: (0, 0)),
            pl.BlockSpec((1, Cp), lambda n: (0, 0)),
        ],
        out_specs=pl.BlockSpec((1, H, W, Cp), lambda n: (n, 0, 0, 0)),
        scratch_shapes=[pltpu.VMEM((H + 2, W + 2, Cin), jnp.float32)],
        compiler_params=pltpu.CompilerParams(
            dimension_semantics=("parallel",)),
    )(x, w_packed, scale_p, bias_p)

    out = out[..., :Cout]                                 # drop channel padding
    return jnp.transpose(out, (0, 3, 1, 2))               # NHWC -> NCHW


# ----------------------------------------------------------------------------
# Deterministic parameter init (He-normal conv, folded eval-mode BatchNorm)
# ----------------------------------------------------------------------------
def init_params(key, in_ch, out_ch, eps=1e-5):
    ks = jax.random.split(key, 6)
    w = jax.random.normal(ks[0], (3, 3, in_ch, out_ch), jnp.float32) * np.sqrt(
        2.0 / (9 * in_ch))
    conv_b = 0.05 * jax.random.normal(ks[1], (out_ch,), jnp.float32)
    gamma = 1.0 + 0.1 * jax.random.normal(ks[2], (out_ch,), jnp.float32)
    beta = 0.1 * jax.random.normal(ks[3], (out_ch,), jnp.float32)
    mean = 0.1 * jax.random.normal(ks[4], (out_ch,), jnp.float32)
    var = 1.0 + 0.1 * jnp.abs(jax.random.normal(ks[5], (out_ch,), jnp.float32))
    scale = gamma / jnp.sqrt(var + eps)
    bias = beta + (conv_b - mean) * scale
    return w, scale, bias


# ----------------------------------------------------------------------------
# Pure-JAX reference (same math & same bf16 input rounding as the kernel)
# ----------------------------------------------------------------------------
def ref_forward(x_nchw, w_hwio, scale, bias):
    x = jnp.transpose(x_nchw, (0, 2, 3, 1)).astype(jnp.bfloat16)
    wb = w_hwio.astype(jnp.bfloat16)
    y = lax.conv_general_dilated(
        x, wb, (1, 1), "SAME",
        dimension_numbers=("NHWC", "HWIO", "NHWC"),
        preferred_element_type=jnp.float32)
    y = jnp.maximum(y * scale + bias, 0.0)
    return jnp.transpose(y, (0, 3, 1, 2))


if __name__ == "__main__":
    N, IN_CH, OUT_CH = 2, 4, 8
    H = W = 16

    key = jax.random.PRNGKey(0)
    k_x, k_p = jax.random.split(key)
    x = jax.random.normal(k_x, (N, IN_CH, H, W), jnp.float32)   # NCHW, like PyTorch
    w, scale, bias = init_params(k_p, IN_CH, OUT_CH)

    out = jax.block_until_ready(conv_bn_relu(x, w, scale, bias))
    ref = jax.block_until_ready(ref_forward(x, w, scale, bias))

    assert out.shape == (N, OUT_CH, H, W), out.shape
    np.testing.assert_allclose(np.asarray(out), np.asarray(ref), rtol=1e-3, atol=1e-4)

    print("KERNEL_OK")
</pallas_src>

<mosaic_0001>
module attributes {stable_mosaic.version = 11 : i64} {
  func.func @conv_bn_relu_kernel(%arg0: i32, %arg1: memref<1x16x16x4xf32, #tpu.memory_space<vmem>>, %arg2: memref<36x128xbf16, #tpu.memory_space<vmem>>, %arg3: memref<1x128xf32, #tpu.memory_space<vmem>>, %arg4: memref<1x128xf32, #tpu.memory_space<vmem>>, %arg5: memref<1x16x16x128xf32, #tpu.memory_space<vmem>>, %arg6: memref<18x18x4xf32, #tpu.memory_space<vmem>>) attributes {dimension_semantics = [#tpu.dimension_semantics<parallel>], iteration_bounds = array<i64: 2>, scalar_prefetch = 0 : i64, scratch_operands = 1 : i64, tpu.core_type = #tpu.core_type<tc>, window_params = [{transform_indices = @transform_0, window_bounds = array<i64: 1, 16, 16, 4>}, {pipeline_mode = #tpu.pipeline_mode<synchronous>, transform_indices = @transform_1, window_bounds = array<i64: 36, 128>}, {pipeline_mode = #tpu.pipeline_mode<synchronous>, transform_indices = @transform_2, window_bounds = array<i64: 1, 128>}, {pipeline_mode = #tpu.pipeline_mode<synchronous>, transform_indices = @transform_3, window_bounds = array<i64: 1, 128>}, {transform_indices = @transform_4, window_bounds = array<i64: 1, 16, 16, 128>}]} {
    %cst = arith.constant 0.000000e+00 : f32
    %0 = vector.broadcast %cst : f32 to vector<18x18x4xf32>
    %c0 = arith.constant 0 : index
    %c0_0 = arith.constant 0 : index
    %c0_1 = arith.constant 0 : index
    %1 = vector.load %arg6[%c0, %c0_0, %c0_1] : memref<18x18x4xf32, #tpu.memory_space<vmem>>, vector<18x18x4xf32>
    tpu.vector_store %arg6[%c0, %c0_0, %c0_1], %0 {strides = array<i32>} : memref<18x18x4xf32, #tpu.memory_space<vmem>>, vector<18x18x4xf32>,
    %c0_2 = arith.constant 0 : index
    %c0_3 = arith.constant 0 : index
    %c0_4 = arith.constant 0 : index
    %c0_5 = arith.constant 0 : index
    %2 = vector.load %arg1[%c0_2, %c0_3, %c0_4, %c0_5] : memref<1x16x16x4xf32, #tpu.memory_space<vmem>>, vector<1x16x16x4xf32>
    %3 = vector.shape_cast %2 : vector<1x16x16x4xf32> to vector<16x16x4xf32>
    %c1 = arith.constant 1 : index
    %c1_6 = arith.constant 1 : index
    %c0_7 = arith.constant 0 : index
    %4 = vector.load %arg6[%c1, %c1_6, %c0_7] : memref<18x18x4xf32, #tpu.memory_space<vmem>>, vector<16x16x4xf32>
    tpu.vector_store %arg6[%c1, %c1_6, %c0_7], %3 {strides = array<i32>} : memref<18x18x4xf32, #tpu.memory_space<vmem>>, vector<16x16x4xf32>,
    %c0_8 = arith.constant 0 : index
    %c0_9 = arith.constant 0 : index
    %c0_10 = arith.constant 0 : index
    %5 = vector.load %arg6[%c0_8, %c0_9, %c0_10] : memref<18x18x4xf32, #tpu.memory_space<vmem>>, vector<18x18x4xf32>
    %6 = vector.extract_strided_slice %5 {offsets = [0, 0, 0], sizes = [16, 16, 4], strides = [1, 1, 1]} : vector<18x18x4xf32> to vector<16x16x4xf32>
    %7 = vector.shape_cast %6 : vector<16x16x4xf32> to vector<256x4xf32>
    %8 = vector.extract_strided_slice %5 {offsets = [0, 1, 0], sizes = [16, 16, 4], strides = [1, 1, 1]} : vector<18x18x4xf32> to vector<16x16x4xf32>
    %9 = vector.shape_cast %8 : vector<16x16x4xf32> to vector<256x4xf32>
    %10 = vector.extract_strided_slice %5 {offsets = [0, 2, 0], sizes = [16, 16, 4], strides = [1, 1, 1]} : vector<18x18x4xf32> to vector<16x16x4xf32>
    %11 = vector.shape_cast %10 : vector<16x16x4xf32> to vector<256x4xf32>
    %12 = vector.extract_strided_slice %5 {offsets = [1, 0, 0], sizes = [16, 16, 4], strides = [1, 1, 1]} : vector<18x18x4xf32> to vector<16x16x4xf32>
    %13 = vector.shape_cast %12 : vector<16x16x4xf32> to vector<256x4xf32>
    %14 = vector.extract_strided_slice %5 {offsets = [1, 1, 0], sizes = [16, 16, 4], strides = [1, 1, 1]} : vector<18x18x4xf32> to vector<16x16x4xf32>
    %15 = vector.shape_cast %14 : vector<16x16x4xf32> to vector<256x4xf32>
    %16 = vector.extract_strided_slice %5 {offsets = [1, 2, 0], sizes = [16, 16, 4], strides = [1, 1, 1]} : vector<18x18x4xf32> to vector<16x16x4xf32>
    %17 = vector.shape_cast %16 : vector<16x16x4xf32> to vector<256x4xf32>
    %18 = vector.extract_strided_slice %5 {offsets = [2, 0, 0], sizes = [16, 16, 4], strides = [1, 1, 1]} : vector<18x18x4xf32> to vector<16x16x4xf32>
    %19 = vector.shape_cast %18 : vector<16x16x4xf32> to vector<256x4xf32>
    %20 = vector.extract_strided_slice %5 {offsets = [2, 1, 0], sizes = [16, 16, 4], strides = [1, 1, 1]} : vector<18x18x4xf32> to vector<16x16x4xf32>
    %21 = vector.shape_cast %20 : vector<16x16x4xf32> to vector<256x4xf32>
    %22 = vector.extract_strided_slice %5 {offsets = [2, 2, 0], sizes = [16, 16, 4], strides = [1, 1, 1]} : vector<18x18x4xf32> to vector<16x16x4xf32>
    %23 = vector.shape_cast %22 : vector<16x16x4xf32> to vector<256x4xf32>
    %24 = tpu.concatenate %7, %9, %11, %13, %15, %17, %19, %21, %23 in 1 : vector<256x4xf32>, vector<256x4xf32>, vector<256x4xf32>, vector<256x4xf32>, vector<256x4xf32>, vector<256x4xf32>, vector<256x4xf32>, vector<256x4xf32>, vector<256x4xf32> -> vector<256x36xf32>
    %25 = arith.truncf %24 : vector<256x36xf32> to vector<256x36xbf16>
    %c0_11 = arith.constant 0 : index
    %c0_12 = arith.constant 0 : index
    %26 = vector.load %arg2[%c0_11, %c0_12] : memref<36x128xbf16, #tpu.memory_space<vmem>>, vector<36x128xbf16>
    %cst_13 = arith.constant dense<0.000000e+00> : vector<256x128xf32>
    %27 = tpu.matmul %25, %26, %cst_13 {dimension_numbers = #tpu.dot_dimension_numbers<[1], [0], [0], [1], [0, 0, 1, 1], [], []>} : vector<256x36xbf16>, vector<36x128xbf16>, vector<256x128xf32> -> vector<256x128xf32>
    %c0_14 = arith.constant 0 : index
    %c0_15 = arith.constant 0 : index
    %28 = vector.load %arg3[%c0_14, %c0_15] : memref<1x128xf32, #tpu.memory_space<vmem>>, vector<1x128xf32>
    %29 = vector.broadcast %28 : vector<1x128xf32> to vector<256x128xf32>
    %30 = arith.mulf %27, %29 : vector<256x128xf32>
    %c0_16 = arith.constant 0 : index
    %c0_17 = arith.constant 0 : index
    %31 = vector.load %arg4[%c0_16, %c0_17] : memref<1x128xf32, #tpu.memory_space<vmem>>, vector<1x128xf32>
    %32 = vector.broadcast %31 : vector<1x128xf32> to vector<256x128xf32>
    %33 = arith.addf %30, %32 : vector<256x128xf32>
    %cst_18 = arith.constant 0.000000e+00 : f32
    %34 = vector.broadcast %cst_18 : f32 to vector<256x128xf32>
    %35 = arith.maximumf %33, %34 : vector<256x128xf32>
    %36 = vector.shape_cast %35 : vector<256x128xf32> to vector<16x16x128xf32>
    %c0_19 = arith.constant 0 : index
    %c0_20 = arith.constant 0 : index
    %c0_21 = arith.constant 0 : index
    %c0_22 = arith.constant 0 : index
    %37 = vector.load %arg5[%c0_19, %c0_20, %c0_21, %c0_22] : memref<1x16x16x128xf32, #tpu.memory_space<vmem>>, vector<1x16x16x128xf32>
    %38 = vector.shape_cast %37 : vector<1x16x16x128xf32> to vector<16x16x128xf32>
    %39 = vector.shape_cast %36 : vector<16x16x128xf32> to vector<1x16x16x128xf32>
    tpu.vector_store %arg5[%c0_19, %c0_20, %c0_21, %c0_22], %39 {strides = array<i32>} : memref<1x16x16x128xf32, #tpu.memory_space<vmem>>, vector<1x16x16x128xf32>,
    return
  }
  func.func @transform_0(%arg0: i32) -> (i32, i32, i32, i32) {
    %c0_i32 = arith.constant 0 : i32
    %c0_i32_0 = arith.constant 0 : i32
    %c0_i32_1 = arith.constant 0 : i32
    %c0_i32_2 = arith.constant 0 : i32
    return %arg0, %c0_i32, %c0_i32_0, %c0_i32_1 : i32, i32, i32, i32
  }
  func.func @transform_1(%arg0: i32) -> (i32, i32) {
    %c0_i32 = arith.constant 0 : i32
    %c0_i32_0 = arith.constant 0 : i32
    %c0_i32_1 = arith.constant 0 : i32
    return %c0_i32, %c0_i32_0 : i32, i32
  }
  func.func @transform_2(%arg0: i32) -> (i32, i32) {
    %c0_i32 = arith.constant 0 : i32
    %c0_i32_0 = arith.constant 0 : i32
    %c0_i32_1 = arith.constant 0 : i32
    return %c0_i32, %c0_i32_0 : i32, i32
  }
  func.func @transform_3(%arg0: i32) -> (i32, i32) {
    %c0_i32 = arith.constant 0 : i32
    %c0_i32_0 = arith.constant 0 : i32
    %c0_i32_1 = arith.constant 0 : i32
    return %c0_i32, %c0_i32_0 : i32, i32
  }
  func.func @transform_4(%arg0: i32) -> (i32, i32, i32, i32) {
    %c0_i32 = arith.constant 0 : i32
    %c0_i32_0 = arith.constant 0 : i32
    %c0_i32_1 = arith.constant 0 : i32
    %c0_i32_2 = arith.constant 0 : i32
    return %arg0, %c0_i32, %c0_i32_0, %c0_i32_1 : i32, i32, i32, i32
  }
}

</mosaic_0001>

<bundles_post_ra>
// kernel: tpu_custom_call.1
= control target key start
LH: loop header
LB: loop body
LE: loop exit
PB: predicated region body
PF: predicated region fallthrough
CT: control target
= control target key end

     0   :  { %9 = vsyncpa [#allocation4], 0  ;;  %s4605_s0 = inlined_call_operand.vmem [shape: f32[2,16,16,4], index: 0, kind: input, shape index: {}]   ;;  %s4606_s1 = inlined_call_operand.vmem [shape: bf16[36,128], index: 1, kind: input, shape index: {}]   ;;  %s4607_s2 = inlined_call_operand.vmem [shape: f32[1,128], index: 2, kind: input, shape index: {}]   ;;  %s4608_s3 = inlined_call_operand.vmem [shape: f32[1,128], index: 3, kind: input, shape index: {}]   ;;  %s4609_s4 = inlined_call_operand.hbm [shape: f32[2,16,16,128], index: 4, kind: output, shape index: {}]  }
   0x1   :  { %11 = vsyncpa [#allocation4 + $0x1], 0  ;;  %s3015_s15 = smov 0   ;;  %s3017_s16 = smov 0  }
   0x2   :  { %s3019_s17 = smov 0   ;;  %s3021_s18 = smov 0  }
   0x3 LB: > { %s3036_s19 = sadd.s32 4294967295, %s2977_s18   ;;  %s2107_s20 = sadd.s32 4294967294, %s2977_s18   ;;  %s2977_s18 = sphi %s3021_s18, %s4729_s18   ;;  %s2973_s17 = sphi %s3019_s17, %s4728_s17   ;;  %s2969_s16 = sphi %s3017_s16, %s4727_s16   ;;  %s2965_s15 = sphi %s3015_s15, %s4726_s15  }
   0x4   : > { %s3040_s21 = sadd.s32 1, %s2977_s18   ;;  %s113_s22 = sadd.s32 1, %s2973_s17 }
   0x5   : > { %s110_s23 = ssub.s32 %s2977_s18, %s3040_s21  ;;  %p123_p0 = scmp.ne.s32.totalorder %s2973_s17, %s2969_s16 }
   0x6   : > { %p111_p1 = scmp.eq.s32.totalorder %s110_s23, 0  ;;  %p124_p2 = scmp.eq.s32.totalorder %s3036_s19, 1 }
   0x7   : > { %p129_p3 = scmp.ne.s32.totalorder %s2969_s16, %s2965_s15  ;;  %p130_p4 = scmp.eq.s32.totalorder %s2107_s20, 1 }
   0x8   : > { %s3051_s24 = scalar_select %p111_p1, %s2973_s17, %s113_s22  }
   0x9   : > { %p3053_p5 = por %p124_p2, %p123_p0  ;;  %p3057_p6 = por %p130_p4, %p129_p3 }
   0xa   : > { %p2110_p7 = scmp.ge.s32.totalorder %s2977_s18, 1  ;;  %p165_p8 = scmp.lt.s32.totalorder %s2977_s18, 3 }
   0xc   : > { %p166_p9 = pnand %p2110_p7, %p165_p8 }
   0xe   : > { %169 = sbr.rel (%p166_p9) target bundleno = 652 (0x28c), region = 36 }
  0x13   : > { %vm197_vm0 = vcmask 31744   ;;  %vm200_vm1 = vcmask 25600   ;;  %p191_p10 = scmp.lt.s32.totalorder %s3036_s19, 1  ;;  %v2979_v0 = vmov 0.0   ;;  %vm420_vm2 = vcmask 1046528   ;;  %s2980_s6 = smov 4  }
  0x14   : > { %198 = vst.msk [vmem:[#allocation2] sm:$0xff] %vm197_vm0, %v2979_v0  ;;  %199 = vst.msk [vmem:[#allocation2 + $0x8] sm:$0xff] %vm197_vm0, %v2979_v0  ;;  %vm501_vm3 = vcmask 1045504   ;;  %s2981_s7 = smov 8   ;;  %s2982_s8 = smov 12   ;;  %vm1724_vm4 = vcmask 1041408  }
  0x15   : > { %201 = vst.msk [vmem:[#allocation2 + $0x10] sm:$0x3] %vm200_vm1, %v2979_v0  ;;  %204 = vst.msk [vmem:[#allocation2 + $0x28] sm:$0x3] %vm200_vm1, %v2979_v0  ;;  %s192_s27 = scalar_select %p191_p10, %s3036_s19, 1  ;;  %vm1408_vm5 = vcmask 64512  }
  0x16   : > { %202 = vst.msk [vmem:[#allocation2 + $0x18] sm:$0xff] %vm197_vm0, %v2979_v0  ;;  %203 = vst.msk [vmem:[#allocation2 + $0x20] sm:$0xff] %vm197_vm0, %v2979_v0  ;;  %s2983_s9 = smov 16   ;;  %s2984_s10 = smov 20   ;;  %vm1441_vm6 = vcmask 97280   ;;  %vm1474_vm7 = vcmask 130048  }
  0x17   : > { %205 = vst.msk [vmem:[#allocation2 + $0x30] sm:$0xff] %vm197_vm0, %v2979_v0  ;;  %206 = vst.msk [vmem:[#allocation2 + $0x38] sm:$0xff] %vm197_vm0, %v2979_v0  ;;  %s2140_s28 = sshll.u32 %s192_s27, 8  ;;  %s2985_s13 = smov 24   ;;  %vm1507_vm8 = vcmask 162816   ;;  %vm1540_vm9 = vcmask 195584  }
  0x18   : > { %207 = vst.msk [vmem:[#allocation2 + $0x40] sm:$0x3] %vm200_vm1, %v2979_v0  ;;  %210 = vst.msk [vmem:[#allocation2 + $0x58] sm:$0x3] %vm200_vm1, %v2979_v0  ;;  %s3124_s5 = scalar_lea.vmem %s4605_s0, %s2140_s28  ;;  %s2986_s27 = smov 28   ;;  %vm1573_vm10 = vcmask 228352  }
  0x19   : > { %208 = vst.msk [vmem:[#allocation2 + $0x48] sm:$0xff] %vm197_vm0, %v2979_v0  ;;  %209 = vst.msk [vmem:[#allocation2 + $0x50] sm:$0xff] %vm197_vm0, %v2979_v0  ;;  %v255_v1 = vld [vmem:[%s3124_s5 + $0x10] sm:$0xff]  ;;  %v256_v2 = vld [vmem:[%s3124_s5 + $0x18] sm:$0xff]  ;;  %s2987_s28 = smov 32   ;;  %vm1606_vm11 = vcmask 261120  }
  0x1a   : > { %211 = vst.msk [vmem:[#allocation2 + $0x60] sm:$0xff] %vm197_vm0, %v2979_v0  ;;  %212 = vst.msk [vmem:[#allocation2 + $0x68] sm:$0xff] %vm197_vm0, %v2979_v0  ;;  %v253_v3 = vld [vmem:[%s3124_s5] sm:$0xff]  ;;  %v254_v4 = vld [vmem:[%s3124_s5 + $0x8] sm:$0xff]  ;;  %vm1675_vm12 = vcmask 293888   ;;  %s188_s29 = sand.u32 1, %s2969_s16  }
  0x1b   : > { %213 = vst.msk [vmem:[#allocation2 + $0x70] sm:$0x3] %vm200_vm1, %v2979_v0  ;;  %216 = vst.msk [vmem:[#allocation2 + $0x88] sm:$0x3] %vm200_vm1, %v2979_v0  ;;  %v257_v5 = vld [vmem:[%s3124_s5 + $0x20] sm:$0xff]  ;;  %v258_v6 = vld [vmem:[%s3124_s5 + $0x28] sm:$0xff] }
  0x1c   : > { %214 = vst.msk [vmem:[#allocation2 + $0x78] sm:$0xff] %vm197_vm0, %v2979_v0  ;;  %215 = vst.msk [vmem:[#allocation2 + $0x80] sm:$0xff] %vm197_vm0, %v2979_v0  ;;  %v3135_v7 = vld [vmem:[#allocation2] sm:$0xff]  ;;  %v3137_v8 = vld [vmem:[#allocation2 + $0x8] sm:$0xff]  ;;  %s2141_s11 = sshll.u32 %s3036_s19, 12  ;;  %s4564_s19 = scalar_lea.sflag [#allocation4], %s188_s29 }
  0x1d   : > { %217 = vst.msk [vmem:[#allocation2 + $0x90] sm:$0xff] %vm197_vm0, %v2979_v0  ;;  %218 = vst.msk [vmem:[#allocation2 + $0x98] sm:$0xff] %vm197_vm0, %v2979_v0  ;;  %v3139_v9 = vld [vmem:[#allocation2 + $0x10] sm:$0x3]  ;;  %v421_v10 = vrot.slane %v3135_v7, 1  ;;  %v422_v11 = vrot.slane %v3137_v8, 1  ;;  %s4555_s20 = scalar_lea.hbm %s4609_s4, %s2141_s11 }
  0x1e   : > { %219 = vst.msk [vmem:[#allocation2 + $0xa0] sm:$0x3] %vm200_vm1, %v2979_v0  ;;  %222 = vst.msk [vmem:[#allocation2 + $0xb8] sm:$0x3] %vm200_vm1, %v2979_v0  ;;  %v424_v12 = vrot.slane %v3139_v9, 1  ;;  %v259_v13 = vld [vmem:[%s3124_s5 + $0x30] sm:$0xff] }
  0x1f   : > { %220 = vst.msk [vmem:[#allocation2 + $0xa8] sm:$0xff] %vm197_vm0, %v2979_v0  ;;  %221 = vst.msk [vmem:[#allocation2 + $0xb0] sm:$0xff] %vm197_vm0, %v2979_v0  ;;  %v260_v14 = vld [vmem:[%s3124_s5 + $0x38] sm:$0xff]  ;;  %v261_v15 = vld [vmem:[%s3124_s5 + $0x40] sm:$0xff]  ;;  %v423_v18 = vsel %vm420_vm2, %v421_v10, %v422_v11  ;;  %s2988_s23 = smov [#allocation3]  }
  0x20   : > { %223 = vst.msk [vmem:[#allocation2 + $0xc0] sm:$0xff] %vm197_vm0, %v2979_v0  ;;  %224 = vst.msk [vmem:[#allocation2 + $0xc8] sm:$0xff] %vm197_vm0, %v2979_v0  ;;  %v262_v16 = vld [vmem:[%s3124_s5 + $0x48] sm:$0xff]  ;;  %v263_v17 = vld [vmem:[%s3124_s5 + $0x50] sm:$0xff]  ;;  %v425_v19 = vsel %vm420_vm2, %v422_v11, %v424_v12 }
  0x21   : > { %225 = vst.msk [vmem:[#allocation2 + $0xd0] sm:$0x3] %vm200_vm1, %v2979_v0  ;;  %228 = vst.msk [vmem:[#allocation2 + $0xe8] sm:$0x3] %vm200_vm1, %v2979_v0  ;;  %v264_v20 = vld [vmem:[%s3124_s5 + $0x58] sm:$0xff]  ;;  %v265_v21 = vld [vmem:[%s3124_s5 + $0x60] sm:$0xff]  ;;  %v2256_v23 = vpack.i.bf16 %v425_v19, %v423_v18 }
  0x22   : > { %226 = vst.msk [vmem:[#allocation2 + $0xd8] sm:$0xff] %vm197_vm0, %v2979_v0  ;;  %227 = vst.msk [vmem:[#allocation2 + $0xe0] sm:$0xff] %vm197_vm0, %v2979_v0  ;;  %v266_v22 = vld [vmem:[%s3124_s5 + $0x68] sm:$0xff]  ;;  %v267_v24 = vld [vmem:[%s3124_s5 + $0x70] sm:$0xff] }
  0x23   : > { %229 = vst.msk [vmem:[#allocation2 + $0xf0] sm:$0xff] %vm197_vm0, %v2979_v0  ;;  %230 = vst.msk [vmem:[#allocation2 + $0xf8] sm:$0xff] %vm197_vm0, %v2979_v0  ;;  %v268_v25 = vld [vmem:[%s3124_s5 + $0x78] sm:$0xff]  ;;  %v269_v26 = vld [vmem:[%s3124_s5 + $0x80] sm:$0xff]  ;;  %2257 = vrot.lane.b32.xlu0 %v2256_v23, %s2980_s6 }
  0x24   : > { %231 = vst.msk [vmem:[#allocation2 + $0x100] sm:$0x3] %vm200_vm1, %v2979_v0  ;;  %234 = vst.msk [vmem:[#allocation2 + $0x118] sm:$0x3] %vm200_vm1, %v2979_v0  ;;  %v270_v27 = vld [vmem:[%s3124_s5 + $0x88] sm:$0xff]  ;;  %v271_v28 = vld [vmem:[%s3124_s5 + $0x90] sm:$0xff] }
  0x25   : > { %232 = vst.msk [vmem:[#allocation2 + $0x108] sm:$0xff] %vm197_vm0, %v2979_v0  ;;  %233 = vst.msk [vmem:[#allocation2 + $0x110] sm:$0xff] %vm197_vm0, %v2979_v0  ;;  %v272_v29 = vld [vmem:[%s3124_s5 + $0x98] sm:$0xff] }
  0x26   : > { %235 = vst.msk [vmem:[#allocation2 + $0x120] sm:$0xff] %vm197_vm0, %v2979_v0  ;;  %236 = vst.msk [vmem:[#allocation2 + $0x128] sm:$0xff] %vm197_vm0, %v2979_v0 }
  0x27   : > { %237 = vst.msk [vmem:[#allocation2 + $0x130] sm:$0x3] %vm200_vm1, %v2979_v0  ;;  %240 = vst.msk [vmem:[#allocation2 + $0x148] sm:$0x3] %vm200_vm1, %v2979_v0 }
  0x28   : > { %238 = vst.msk [vmem:[#allocation2 + $0x138] sm:$0xff] %vm197_vm0, %v2979_v0  ;;  %239 = vst.msk [vmem:[#allocation2 + $0x140] sm:$0xff] %vm197_vm0, %v2979_v0 }
  0x29   : > { %241 = vst.msk [vmem:[#allocation2 + $0x150] sm:$0xff] %vm197_vm0, %v2979_v0  ;;  %242 = vst.msk [vmem:[#allocation2 + $0x158] sm:$0xff] %vm197_vm0, %v2979_v0 }
  0x2a   : > { %243 = vst.msk [vmem:[#allocation2 + $0x160] sm:$0x3] %vm200_vm1, %v2979_v0  ;;  %246 = vst.msk [vmem:[#allocation2 + $0x178] sm:$0x3] %vm200_vm1, %v2979_v0 }
  0x2b   : > { %244 = vst.msk [vmem:[#allocation2 + $0x168] sm:$0xff] %vm197_vm0, %v2979_v0  ;;  %245 = vst.msk [vmem:[#allocation2 + $0x170] sm:$0xff] %vm197_vm0, %v2979_v0 }
  0x2c   : > { %247 = vst.msk [vmem:[#allocation2 + $0x180] sm:$0xff] %vm197_vm0, %v2979_v0  ;;  %248 = vst.msk [vmem:[#allocation2 + $0x188] sm:$0xff] %vm197_vm0, %v2979_v0 }
  0x2d   : > { %249 = vst.msk [vmem:[#allocation2 + $0x190] sm:$0x3] %vm200_vm1, %v2979_v0  ;;  %252 = vst.msk [vmem:[#allocation2 + $0x1a8] sm:$0x3] %vm200_vm1, %v2979_v0 }
  0x2e   : > { %250 = vst.msk [vmem:[#allocation2 + $0x198] sm:$0xff] %vm197_vm0, %v2979_v0  ;;  %251 = vst.msk [vmem:[#allocation2 + $0x1a0] sm:$0xff] %vm197_vm0, %v2979_v0 }
  0x2f   : > { %288 = vst.msk [vmem:[#allocation2 + $0x31] sm:$0xff] %vm197_vm0, %v255_v1  ;;  %289 = vst.msk [vmem:[#allocation2 + $0x39] sm:$0xff] %vm197_vm0, %v256_v2 }
  0x30   : > { %286 = vst.msk [vmem:[#allocation2 + $0x19] sm:$0xff] %vm197_vm0, %v253_v3  ;;  %287 = vst.msk [vmem:[#allocation2 + $0x21] sm:$0xff] %vm197_vm0, %v254_v4 }
  0x31   : > { %290 = vst.msk [vmem:[#allocation2 + $0x49] sm:$0xff] %vm197_vm0, %v257_v5  ;;  %291 = vst.msk [vmem:[#allocation2 + $0x51] sm:$0xff] %vm197_vm0, %v258_v6 }
  0x32   : > { %292 = vst.msk [vmem:[#allocation2 + $0x61] sm:$0xff] %vm197_vm0, %v259_v13  ;;  %293 = vst.msk [vmem:[#allocation2 + $0x69] sm:$0xff] %vm197_vm0, %v260_v14 }
  0x33   : > { %294 = vst.msk [vmem:[#allocation2 + $0x79] sm:$0xff] %vm197_vm0, %v261_v15  ;;  %295 = vst.msk [vmem:[#allocation2 + $0x81] sm:$0xff] %vm197_vm0, %v262_v16 }
  0x34   : > { %296 = vst.msk [vmem:[#allocation2 + $0x91] sm:$0xff] %vm197_vm0, %v263_v17  ;;  %297 = vst.msk [vmem:[#allocation2 + $0x99] sm:$0xff] %vm197_vm0, %v264_v20 }
  0x35   : > { %298 = vst.msk [vmem:[#allocation2 + $0xa9] sm:$0xff] %vm197_vm0, %v265_v21  ;;  %299 = vst.msk [vmem:[#allocation2 + $0xb1] sm:$0xff] %vm197_vm0, %v266_v22 }
  0x36   : > { %300 = vst.msk [vmem:[#allocation2 + $0xc1] sm:$0xff] %vm197_vm0, %v267_v24  ;;  %301 = vst.msk [vmem:[#allocation2 + $0xc9] sm:$0xff] %vm197_vm0, %v268_v25  ;;  %v3175_v30 = vld [vmem:[#allocation2 + $0x30] sm:$0xff]  ;;  %v3177_v31 = vld [vmem:[#allocation2 + $0x38] sm:$0xff] }
  0x37   : > { %302 = vst.msk [vmem:[#allocation2 + $0xd9] sm:$0xff] %vm197_vm0, %v269_v26  ;;  %4650 = vst [vmem:[#allocation6_spill] sm:$0xff] %v3175_v30  ;;  %v3179_v32 = vld [vmem:[#allocation2 + $0x40] sm:$0x3]  ;;  %v431_v33 = vrot.slane %v3175_v30, 1  ;;  %v432_v34 = vrot.slane %v3177_v31, 1 }
  0x38   : > { %303 = vst.msk [vmem:[#allocation2 + $0xe1] sm:$0xff] %vm197_vm0, %v270_v27  ;;  %304 = vst.msk [vmem:[#allocation2 + $0xf1] sm:$0xff] %vm197_vm0, %v271_v28  ;;  %v434_v35 = vrot.slane %v3179_v32, 1  ;;  %v3187_v36 = vld [vmem:[#allocation2 + $0x18] sm:$0xff]  ;;  %v3189_v37 = vld [vmem:[#allocation2 + $0x20] sm:$0xff] }
  0x39   : > { %305 = vst.msk [vmem:[#allocation2 + $0xf9] sm:$0xff] %vm197_vm0, %v272_v29  ;;  %4651 = vst [vmem:[#allocation7_spill] sm:$0xff] %v3187_v36  ;;  %v3191_v38 = vld [vmem:[#allocation2 + $0x28] sm:$0x3]  ;;  %v426_v39 = vrot.slane %v3187_v36, 1  ;;  %v427_v40 = vrot.slane %v3189_v37, 1  ;;  %v433_v43 = vsel %vm420_vm2, %v431_v33, %v432_v34 }
  0x3a   : > { %4652 = vst [vmem:[#allocation8_spill] sm:$0xff] %v3189_v37  ;;  %v3195_v41 = vld [vmem:[#allocation2 + $0x48] sm:$0xff]  ;;  %v3197_v42 = vld [vmem:[#allocation2 + $0x50] sm:$0xff]  ;;  %v435_v44 = vsel %vm420_vm2, %v432_v34, %v434_v35  ;;  %v429_v45 = vrot.slane %v3191_v38, 1  ;;  %v3202_v46 = vld [vmem:[#allocation2 + $0x58] sm:$0x3] }
  0x3b   : > { %v436_v47 = vrot.slane %v3195_v41, 1  ;;  %v3205_v48 = vld [vmem:[#allocation2 + $0x60] sm:$0xff]  ;;  %v3207_v49 = vld [vmem:[#allocation2 + $0x68] sm:$0xff]  ;;  %v3209_v50 = vpack.i.bf16 %v435_v44, %v433_v43  ;;  %v428_v51 = vsel %vm420_vm2, %v426_v39, %v427_v40  ;;  %v437_v52 = vrot.slane %v3197_v42, 1  ;;  %v3214_v54 = vld [vmem:[#allocation2 + $0x70] sm:$0x3] }
  0x3c   : > { %v439_v53 = vrot.slane %v3202_v46, 1  ;;  %v3216_v55 = vld [vmem:[#allocation2 + $0x78] sm:$0xff]  ;;  %v3218_v56 = vld [vmem:[#allocation2 + $0x80] sm:$0xff]  ;;  %v430_v57 = vsel %vm420_vm2, %v427_v40, %v429_v45  ;;  %v441_v58 = vrot.slane %v3205_v48, 1  ;;  %v442_v59 = vrot.slane %v3207_v49, 1  ;;  %v3226_v62 = vld [vmem:[#allocation2 + $0x90] sm:$0xff] }
  0x3d   : > { %4653 = vst [vmem:[#allocation9_spill] sm:$0xff] %v3209_v50  ;;  %v444_v60 = vrot.slane %v3214_v54, 1  ;;  %v3224_v61 = vld [vmem:[#allocation2 + $0x88] sm:$0x3]  ;;  %2267 = vrot.lane.b32.xlu1 %v3209_v50, %s2980_s6  ;;  %v3230_v63 = vpack.i.bf16 %v430_v57, %v428_v51  ;;  %v438_v0 = vsel %vm420_vm2, %v436_v47, %v437_v52  ;;  %v446_v2 = vrot.slane %v3216_v55, 1  ;;  %v3235_v3 = vld [vmem:[#allocation2 + $0x98] sm:$0xff] }
  0x3e   : > { %v440_v1 = vsel %vm420_vm2, %v437_v52, %v439_v53  ;;  %v3237_v4 = vld [vmem:[#allocation2 + $0xa0] sm:$0x3]  ;;  %v3239_v5 = vld [vmem:[#allocation2 + $0xa8] sm:$0xff]  ;;  %v443_v10 = vsel %vm420_vm2, %v441_v58, %v442_v59  ;;  %v447_v12 = vrot.slane %v3218_v56, 1  ;;  %v3246_v13 = vld [vmem:[#allocation2 + $0xb0] sm:$0xff]  ;;  %v449_v17 = vrot.slane %v3224_v61, 1 }
  0x3f   : > { %4654 = vst [vmem:[#allocation10_spill] sm:$0xff] %v3230_v63  ;;  %v3241_v6 = vpack.i.bf16 %v440_v1, %v438_v0  ;;  %v445_v11 = vsel %vm420_vm2, %v442_v59, %v444_v60  ;;  %v3248_v14 = vld [vmem:[#allocation2 + $0xb8] sm:$0x3]  ;;  %v3250_v15 = vld [vmem:[#allocation2 + $0xc0] sm:$0xff]  ;;  %2262 = vrot.lane.b32.xlu0 %v3230_v63, %s2980_s6  ;;  %v451_v18 = vrot.slane %v3226_v62, 1  ;;  %v452_v19 = vrot.slane %v3235_v3, 1 }
  0x40   : > { %v3254_v16 = vpack.i.bf16 %v445_v11, %v443_v10  ;;  %v3259_v20 = vld [vmem:[#allocation2 + $0xc8] sm:$0xff]  ;;  %v3261_v21 = vld [vmem:[#allocation2 + $0xd0] sm:$0x3]  ;;  %v448_v22 = vsel %vm420_vm2, %v446_v2, %v447_v12  ;;  %v454_v23 = vrot.slane %v3237_v4, 1  ;;  %v456_v24 = vrot.slane %v3239_v5, 1  ;;  %v3267_v26 = vld [vmem:[#allocation2 + $0xd8] sm:$0xff] }
  0x41   : > { %4655 = vst [vmem:[#allocation11_spill] sm:$0xff] %v3241_v6  ;;  %v457_v25 = vrot.slane %v3246_v13, 1  ;;  %v3269_v27 = vld [vmem:[#allocation2 + $0xe0] sm:$0xff]  ;;  %v3271_v28 = vld [vmem:[#allocation2 + $0xf0] sm:$0xff]  ;;  %2272 = vrot.lane.b32.xlu1 %v3241_v6, %s2980_s6  ;;  %v450_v29 = vsel %vm420_vm2, %v447_v12, %v449_v17  ;;  %v453_v33 = vsel %vm420_vm2, %v451_v18, %v452_v19  ;;  %v459_v34 = vrot.slane %v3248_v14, 1  ;;  %v3281_v40 = vld [vmem:[#allocation2 + $0xf8] sm:$0xff] }
  0x42   : > { %4656 = vst [vmem:[#allocation12_spill] sm:$0xff] %v3254_v16  ;;  %v461_v35 = vrot.slane %v3250_v15, 1  ;;  %v3279_v39 = vld [vmem:[#allocation2 + $0xe8] sm:$0x3]  ;;  %v273_v43 = vld [vmem:[%s3124_s5 + $0xa0] sm:$0xff]  ;;  %v3284_v44 = vpack.i.bf16 %v450_v29, %v448_v22  ;;  %v455_v45 = vsel %vm420_vm2, %v452_v19, %v454_v23  ;;  %v462_v51 = vrot.slane %v3259_v20, 1 }
  0x43   : > { %v458_v47 = vsel %vm420_vm2, %v456_v24, %v457_v25  ;;  %v3289_v52 = vld [vmem:[#allocation2 + $0x100] sm:$0x3]  ;;  %v274_v53 = vld [vmem:[%s3124_s5 + $0xa8] sm:$0xff]  ;;  %306 = vst.msk [vmem:[#allocation2 + $0x109] sm:$0xff] %vm197_vm0, %v273_v43  ;;  %v275_v57 = vld [vmem:[%s3124_s5 + $0xb0] sm:$0xff]  ;;  %2277 = vrot.lane.b32.xlu0 %v3254_v16, %s2980_s6  ;;  %v3296_v58 = vpack.i.bf16 %v455_v45, %v453_v33  ;;  %v460_v59 = vsel %vm420_vm2, %v457_v25, %v459_v34  ;;  %v464_v60 = vrot.slane %v3261_v21, 1 }
  0x44   : > { %4657 = vst [vmem:[#allocation13_spill] sm:$0xff] %v3284_v44  ;;  %v466_v0 = vrot.slane %v3267_v26, 1  ;;  %307 = vst.msk [vmem:[#allocation2 + $0x111] sm:$0xff] %vm197_vm0, %v274_v53  ;;  %v276_v1 = vld [vmem:[%s3124_s5 + $0xb8] sm:$0xff]  ;;  %v277_v2 = vld [vmem:[%s3124_s5 + $0xc0] sm:$0xff]  ;;  %v3306_v11 = vpack.i.bf16 %v460_v59, %v458_v47  ;;  %v463_v12 = vsel %vm420_vm2, %v461_v35, %v462_v51  ;;  %v467_v17 = vrot.slane %v3269_v27, 1 }
  0x45   : > { %4658 = vst [vmem:[#allocation14_spill] sm:$0xff] %v3296_v58  ;;  %308 = vst.msk [vmem:[#allocation2 + $0x121] sm:$0xff] %vm197_vm0, %v275_v57  ;;  %v278_v10 = vld [vmem:[%s3124_s5 + $0xc8] sm:$0xff]  ;;  %v469_v18 = vrot.slane %v3279_v39, 1  ;;  %v279_v19 = vld [vmem:[%s3124_s5 + $0xd0] sm:$0xff]  ;;  %2282 = vrot.lane.b32.xlu1 %v3284_v44, %s2980_s6  ;;  %v465_v24 = vsel %vm420_vm2, %v462_v51, %v464_v60  ;;  %v471_v25 = vrot.slane %v3271_v28, 1 }
  0x46   : > { %4659 = vst [vmem:[#allocation15_spill] sm:$0xff] %v3306_v11  ;;  %309 = vst.msk [vmem:[#allocation2 + $0x129] sm:$0xff] %vm197_vm0, %v276_v1  ;;  %v280_v22 = vld [vmem:[%s3124_s5 + $0xd8] sm:$0xff]  ;;  %v281_v23 = vld [vmem:[%s3124_s5 + $0xe0] sm:$0xff]  ;;  %v472_v29 = vrot.slane %v3281_v40, 1  ;;  %v474_v33 = vrot.slane %v3289_v52, 1  ;;  %v468_v45 = vsel %vm420_vm2, %v466_v0, %v467_v17  ;;  %v3337_v53 = vpack.i.bf16 %v465_v24, %v463_v12 }
  0x47   : > { %310 = vst.msk [vmem:[#allocation2 + $0x139] sm:$0xff] %vm197_vm0, %v277_v2  ;;  %311 = vst.msk [vmem:[#allocation2 + $0x141] sm:$0xff] %vm197_vm0, %v278_v10  ;;  %v282_v34 = vld [vmem:[%s3124_s5 + $0xe8] sm:$0xff]  ;;  %v283_v35 = vld [vmem:[%s3124_s5 + $0xf0] sm:$0xff]  ;;  %v470_v47 = vsel %vm420_vm2, %v467_v17, %v469_v18  ;;  %v505_v51 = vrot.slane %v3139_v9, 2  ;;  %2287 = vrot.lane.b32.xlu0 %v3296_v58, %s2980_s6  ;;  %v502_v60 = vrot.slane %v3135_v7, 2 }
  0x48   : > { %312 = vst.msk [vmem:[#allocation2 + $0x151] sm:$0xff] %vm197_vm0, %v279_v19  ;;  %313 = vst.msk [vmem:[#allocation2 + $0x159] sm:$0xff] %vm197_vm0, %v280_v22  ;;  %v284_v43 = vld [vmem:[%s3124_s5 + $0xf8] sm:$0xff]  ;;  %v473_v57 = vsel %vm420_vm2, %v471_v25, %v472_v29  ;;  %v475_v59 = vsel %vm420_vm2, %v472_v29, %v474_v33  ;;  %v503_v0 = vrot.slane %v3137_v8, 2  ;;  %v3346_v9 = vpack.i.bf16 %v470_v47, %v468_v45 }
  0x49   : > { %314 = vst.msk [vmem:[#allocation2 + $0x169] sm:$0xff] %vm197_vm0, %v281_v23  ;;  %315 = vst.msk [vmem:[#allocation2 + $0x171] sm:$0xff] %vm197_vm0, %v282_v34  ;;  %2292 = vrot.lane.b32.xlu1 %v3306_v11, %s2980_s6  ;;  %v507_v10 = vrot.slane %v3187_v36, 2  ;;  %v508_v12 = vrot.slane %v3189_v37, 2  ;;  %v510_v19 = vrot.slane %v3191_v38, 2  ;;  %v3362_v22 = vpack.i.bf16 %v475_v59, %v473_v57 }
  0x4a   : > { %316 = vst.msk [vmem:[#allocation2 + $0x181] sm:$0xff] %vm197_vm0, %v283_v35  ;;  %317 = vst.msk [vmem:[#allocation2 + $0x189] sm:$0xff] %vm197_vm0, %v284_v43  ;;  %v3348_v2 = vld [vmem:[#allocation2 + $0x108] sm:$0xff]  ;;  %v3380_v47 = vsel %vm501_vm3, %v502_v60, %v503_v0  ;;  %v3383_v57 = vsel %vm501_vm3, %v503_v0, %v505_v51  ;;  %v517_v36 = vrot.slane %v3195_v41, 2 }
  0x4b   : > { %4660 = vst [vmem:[#allocation16_spill] sm:$0xff] %v3337_v53  ;;  %4661 = vst [vmem:[#allocation17_spill] sm:$0xff] %v3346_v9  ;;  %v3352_v17 = vld [vmem:[#allocation2 + $0x110] sm:$0xff]  ;;  %v3354_v18 = vld [vmem:[#allocation2 + $0x118] sm:$0x3]  ;;  %v476_v7 = vrot.slane %v3348_v2, 1  ;;  %2297 = vrot.lane.b32.xlu0 %v3337_v53, %s2980_s6 }
  0x4c   : > { %v3357_v8 = vld [vmem:[#allocation2 + $0x120] sm:$0xff]  ;;  %4662 = vst [vmem:[#allocation18_spill] sm:$0xff] %v3362_v22  ;;  %v477_v23 = vrot.slane %v3352_v17, 1  ;;  %v479_v24 = vrot.slane %v3354_v18, 1 }
  0x4d   : > { %v3366_v25 = vld [vmem:[#allocation2 + $0x128] sm:$0xff]  ;;  %v3368_v29 = vld [vmem:[#allocation2 + $0x130] sm:$0x3]  ;;  %v481_v33 = vrot.slane %v3357_v8, 1  ;;  %2302 = vrot.lane.b32.xlu1 %v3346_v9, %s2980_s6 }
  0x4e   : > { %v482_v34 = vrot.slane %v3366_v25, 1  ;;  %v484_v35 = vrot.slane %v3368_v29, 1  ;;  %v3373_v38 = vld [vmem:[#allocation2 + $0x138] sm:$0xff]  ;;  %v3375_v43 = vld [vmem:[#allocation2 + $0x140] sm:$0xff]  ;;  %v3377_v45 = vld [vmem:[#allocation2 + $0x148] sm:$0x3]  ;;  %v478_v59 = vsel %vm420_vm2, %v476_v7, %v477_v23  ;;  %v480_v1 = vsel %vm420_vm2, %v477_v23, %v479_v24 }
  0x4f   : > { %v486_v53 = vrot.slane %v3373_v38, 1  ;;  %v487_v11 = vrot.slane %v3375_v43, 1  ;;  %v3391_v58 = vld [vmem:[#allocation2 + $0x150] sm:$0xff]  ;;  %v3393_v44 = vld [vmem:[#allocation2 + $0x158] sm:$0xff]  ;;  %v3395_v60 = vld [vmem:[#allocation2 + $0x160] sm:$0x3]  ;;  %v3397_v16 = vpack.i.bf16 %v480_v1, %v478_v59  ;;  %2307 = vrot.lane.b32.xlu0 %v3362_v22, %s2980_s6 }
  0x50   : > { %v483_v51 = vsel %vm420_vm2, %v481_v33, %v482_v34  ;;  %v485_v0 = vsel %vm420_vm2, %v482_v34, %v484_v35  ;;  %v489_v7 = vrot.slane %v3377_v45, 1  ;;  %v3402_v9 = vld [vmem:[#allocation2 + $0x168] sm:$0xff]  ;;  %v3404_v23 = vld [vmem:[#allocation2 + $0x170] sm:$0xff]  ;;  %v3406_v24 = vld [vmem:[#allocation2 + $0x178] sm:$0x3]  ;;  %v491_v59 = vrot.slane %v3391_v58, 1 }
  0x51   : > { %4663 = vst [vmem:[#allocation19_spill] sm:$0xff] %v3397_v16  ;;  %v3410_v6 = vpack.i.bf16 %v485_v0, %v483_v51  ;;  %v488_v1 = vsel %vm420_vm2, %v486_v53, %v487_v11  ;;  %v492_v33 = vrot.slane %v3393_v44, 1  ;;  %v494_v35 = vrot.slane %v3395_v60, 1  ;;  %2312 = vrot.lane.b32.xlu1 %v3397_v16, %s2980_s6 }
  0x52   : > { %v490_v34 = vsel %vm420_vm2, %v487_v11, %v489_v7  ;;  %v496_v50 = vrot.slane %v3402_v9, 1  ;;  %v497_v63 = vrot.slane %v3404_v23, 1  ;;  %v499_v53 = vrot.slane %v3406_v24, 1 }
  0x53   : > { %4664 = vst [vmem:[#allocation20_spill] sm:$0xff] %v3410_v6  ;;  %v3421_v22 = vpack.i.bf16 %v490_v34, %v488_v1  ;;  %v493_v51 = vsel %vm420_vm2, %v491_v59, %v492_v33  ;;  %v512_v0 = vrot.slane %v3175_v30, 2  ;;  %v495_v37 = vsel %vm420_vm2, %v492_v33, %v494_v35  ;;  %2317 = vrot.lane.b32.xlu0 %v3410_v6, %s2980_s6 }
  0x54   : > { %v498_v11 = vsel %vm420_vm2, %v496_v50, %v497_v63  ;;  %v513_v7 = vrot.slane %v3177_v31, 2  ;;  %v3432_v16 = vpack.i.bf16 %v495_v37, %v493_v51  ;;  %v500_v1 = vsel %vm420_vm2, %v497_v63, %v499_v53 }
  0x55   : > { %v518_v59 = vrot.slane %v3197_v42, 2  ;;  %v520_v34 = vrot.slane %v3202_v46, 2  ;;  %v509_v30 = vsel %vm501_vm3, %v507_v10, %v508_v12  ;;  %v511_v33 = vsel %vm501_vm3, %v508_v12, %v510_v19  ;;  %2322 = vrot.lane.b32.xlu1 %v3421_v22, %s2980_s6 }
  0x56   : > { %v522_v50 = vrot.slane %v3205_v48, 2  ;;  %v523_v35 = vrot.slane %v3207_v49, 2  ;;  %v3443_v6 = vpack.i.bf16 %v500_v1, %v498_v11  ;;  %v525_v37 = vrot.slane %v3214_v54, 2 }
  0x57   : > { %v2336_v63 = vpack.i.bf16 %v3383_v57, %v3380_v47  ;;  %v514_v46 = vsel %vm501_vm3, %v512_v0, %v513_v7  ;;  %2327 = vrot.lane.b32.xlu0 %v3432_v16, %s2980_s6  ;;  %v3451_v10 = vpack.i.bf16 %v511_v33, %v509_v30  ;;  %v4666_v12 = vrot.slane %v3179_v32, 2 }
  0x58   : > { %4665 = vst [vmem:[#allocation21_spill] sm:$0xff] %v3443_v6  ;;  %v519_v51 = vsel %vm501_vm3, %v517_v36, %v518_v59  ;;  %v521_v53 = vsel %vm501_vm3, %v518_v59, %v520_v34  ;;  %v524_v54 = vsel %vm501_vm3, %v522_v50, %v523_v35  ;;  %v527_v11 = vrot.slane %v3216_v55, 2 }
  0x59   : > { %v516_v19 = vsel %vm501_vm3, %v513_v7, %v4666_v12  ;;  %v528_v47 = vrot.slane %v3218_v56, 2  ;;  %v530_v57 = vrot.slane %v3224_v61, 2  ;;  %2332 = vrot.lane.b32.xlu1 %v3443_v6, %s2980_s6  ;;  %v526_v30 = vsel %vm501_vm3, %v523_v35, %v525_v37 }
  0x5a   : > { %v532_v32 = vrot.slane %v3226_v62, 2  ;;  %v533_v0 = vrot.slane %v3235_v3, 2  ;;  %v535_v36 = vrot.slane %v3237_v4, 2  ;;  %v537_v7 = vrot.slane %v3239_v5, 2 }
  0x5b   : > { %v538_v1 = vrot.slane %v3246_v13, 2  ;;  %2337 = vrot.lane.b32.xlu0 %v2336_v63, %s2981_s7  ;;  %v3471_v59 = vpack.i.bf16 %v516_v19, %v514_v46  ;;  %v540_v61 = vrot.slane %v3248_v14, 2  ;;  %v3474_v34 = vpack.i.bf16 %v521_v53, %v519_v51 }
  0x5c   : > { %v3476_v33 = vpack.i.bf16 %v526_v30, %v524_v54  ;;  %v529_v50 = vsel %vm501_vm3, %v527_v11, %v528_v47  ;;  %v531_v4 = vsel %vm501_vm3, %v528_v47, %v530_v57  ;;  %v534_v35 = vsel %vm501_vm3, %v532_v32, %v533_v0 }
  0x5d   : > { %2342 = vrot.lane.b32.xlu1 %v3451_v10, %s2981_s7  ;;  %v536_v37 = vsel %vm501_vm3, %v533_v0, %v535_v36  ;;  %v542_v63 = vrot.slane %v3250_v15, 2  ;;  %v539_v46 = vsel %vm501_vm3, %v537_v7, %v538_v1  ;;  %v543_v14 = vrot.slane %v3259_v20, 2 }
  0x5e   : > { %v545_v12 = vrot.slane %v3261_v21, 2  ;;  %v547_v19 = vrot.slane %v3267_v26, 2  ;;  %v541_v51 = vsel %vm501_vm3, %v538_v1, %v540_v61  ;;  %v548_v53 = vrot.slane %v3269_v27, 2 }
  0x5f   : > { %2347 = vrot.lane.b32.xlu0 %v3471_v59, %s2981_s7  ;;  %v550_v54 = vrot.slane %v3279_v39, 2  ;;  %v552_v11 = vrot.slane %v3271_v28, 2  ;;  %v553_v47 = vrot.slane %v3281_v40, 2  ;;  %v555_v57 = vrot.slane %v3289_v52, 2 }
  0x60   : > { %v557_v30 = vrot.slane %v3348_v2, 2  ;;  %v558_v21 = vrot.slane %v3352_v17, 2  ;;  %v3501_v32 = vpack.i.bf16 %v531_v4, %v529_v50  ;;  %v560_v0 = vrot.slane %v3354_v18, 2 }
  0x61   : > { %2352 = vrot.lane.b32.xlu1 %v3474_v34, %s2981_s7  ;;  %v3504_v36 = vpack.i.bf16 %v536_v37, %v534_v35  ;;  %v562_v39 = vrot.slane %v3357_v8, 2  ;;  %v563_v7 = vrot.slane %v3366_v25, 2  ;;  %v565_v1 = vrot.slane %v3368_v29, 2 }
  0x62   : > { %v3511_v52 = vpack.i.bf16 %v541_v51, %v539_v46  ;;  %v544_v61 = vsel %vm501_vm3, %v542_v63, %v543_v14  ;;  %v546_v50 = vsel %vm501_vm3, %v543_v14, %v545_v12  ;;  %v549_v4 = vsel %vm501_vm3, %v547_v19, %v548_v53 }
  0x63   : > { %2357 = vrot.lane.b32.xlu0 %v3476_v33, %s2981_s7  ;;  %v551_v18 = vsel %vm501_vm3, %v548_v53, %v550_v54  ;;  %v554_v35 = vsel %vm501_vm3, %v552_v11, %v553_v47  ;;  %v556_v37 = vsel %vm501_vm3, %v553_v47, %v555_v57  ;;  %v559_v6 = vsel %vm501_vm3, %v557_v30, %v558_v21 }
  0x64   : > { %v561_v29 = vsel %vm501_vm3, %v558_v21, %v560_v0  ;;  %v567_v46 = vrot.slane %v3373_v38, 2  ;;  %v568_v63 = vrot.slane %v3375_v43, 2  ;;  %v570_v14 = vrot.slane %v3377_v45, 2 }
  0x65   : > { %2362 = vrot.lane.b32.xlu1 %v3501_v32, %s2981_s7  ;;  %v564_v12 = vsel %vm501_vm3, %v562_v39, %v563_v7  ;;  %v566_v19 = vsel %vm501_vm3, %v563_v7, %v565_v1  ;;  %v3530_v51 = vpack.i.bf16 %v546_v50, %v544_v61  ;;  %v3532_v53 = vpack.i.bf16 %v551_v18, %v549_v4 }
  0x66   : > { %v3534_v54 = vpack.i.bf16 %v556_v37, %v554_v35  ;;  %v3536_v11 = vpack.i.bf16 %v561_v29, %v559_v6  ;;  %v572_v47 = vrot.slane %v3391_v58, 2  ;;  %v573_v57 = vrot.slane %v3393_v44, 2  ;;  %v4669_v37 = vld [vmem:[#allocation8_spill] sm:$0xff] }
  0x67   : > { %2367 = vrot.lane.b32.xlu0 %v3504_v36, %s2981_s7  ;;  %4667 = vst [vmem:[#allocation22_spill] sm:$0xff] %v3532_v53  ;;  %v3542_v45 = vpack.i.bf16 %v566_v19, %v564_v12  ;;  %v569_v30 = vsel %vm501_vm3, %v567_v46, %v568_v63  ;;  %v571_v21 = vsel %vm501_vm3, %v568_v63, %v570_v14  ;;  %v575_v0 = vrot.slane %v3395_v60, 2  ;;  %v4670_v46 = vld [vmem:[#allocation6_spill] sm:$0xff] }
  0x68   : > { %v577_v6 = vrot.slane %v3402_v9, 2  ;;  %v578_v39 = vrot.slane %v3404_v23, 2  ;;  %v3553_v7 = vpack.i.bf16 %v571_v21, %v569_v30  ;;  %v574_v1 = vsel %vm501_vm3, %v572_v47, %v573_v57  ;;  %v368_v30 = vld [vmem:[#allocation2 + $0x190] sm:$0x3] }
  0x69   : > { %2372 = vrot.lane.b32.xlu1 %v3511_v52, %s2981_s7  ;;  %v576_v61 = vsel %vm501_vm3, %v573_v57, %v575_v0  ;;  %v580_v50 = vrot.slane %v3406_v24, 2  ;;  %v4668_v24 = vld [vmem:[#allocation7_spill] sm:$0xff]  ;;  %v3580_v63 = vpack.i.bf16 %v3177_v31, %v4670_v46  ;;  %v3585_v14 = vpack.i.bf16 %v3197_v42, %v3195_v41  ;;  %v4675_v46 = vld [vmem:[#allocation12_spill] sm:$0xff] }
  0x6a   : > { %v579_v60 = vsel %vm501_vm3, %v577_v6, %v578_v39  ;;  %v3564_v18 = vpack.i.bf16 %v576_v61, %v574_v1  ;;  %v2416_v29 = vpack.i.bf16 %v4669_v37, %v4668_v24  ;;  %v3591_v12 = vpack.i.bf16 %v3207_v49, %v3205_v48  ;;  %v4672_v1 = vld [vmem:[#allocation10_spill] sm:$0xff]  ;;  %v4674_v24 = vld [vmem:[#allocation11_spill] sm:$0xff] }
  0x6b   : > { %2377 = vrot.lane.b32.xlu0 %v3530_v51, %s2981_s7  ;;  %v581_v4 = vsel %vm501_vm3, %v578_v39, %v580_v50  ;;  %v3597_v31 = vpack.i.bf16 %v3218_v56, %v3216_v55  ;;  %v3603_v41 = vpack.i.bf16 %v3235_v3, %v3226_v62  ;;  %v3609_v42 = vpack.i.bf16 %v3246_v13, %v3239_v5 }
  0x6c   : > { %v3568_v35 = vpack.i.bf16 %v581_v4, %v579_v60  ;;  %v2451_v19 = vpack.i.bf16 %v3259_v20, %v3250_v15  ;;  %v2456_v47 = vpack.i.bf16 %v3269_v27, %v3267_v26  ;;  %v2461_v57 = vpack.i.bf16 %v3281_v40, %v3271_v28  ;;  %v366_v26 = vld [vmem:[#allocation2 + $0x180] sm:$0xff]  ;;  %v367_v27 = vld [vmem:[#allocation2 + $0x188] sm:$0xff] }
  0x6d   : > { %2382 = vrot.lane.b32.xlu1 %v3532_v53, %s2981_s7  ;;  %v2466_v5 = vpack.i.bf16 %v3352_v17, %v3348_v2  ;;  %v3628_v13 = vpack.i.bf16 %v3366_v25, %v3357_v8  ;;  %v3633_v15 = vpack.i.bf16 %v3375_v43, %v3373_v38  ;;  %v3639_v20 = vpack.i.bf16 %v3393_v44, %v3391_v58  ;;  %v4673_v60 = vld [vmem:[#allocation9_spill] sm:$0xff] }
  0x6e   : > { %v3645_v28 = vpack.i.bf16 %v3404_v23, %v3402_v9  ;;  %v586_v40 = vrot.slane %v367_v27, 1  ;;  %v585_v2 = vrot.slane %v366_v26, 1  ;;  %v3649_v17 = vpack.i.bf16 %v367_v27, %v366_v26 }
  0x6f   : > { %2387 = vrot.lane.b32.xlu0 %v3534_v54, %s2981_s7  ;;  %v588_v21 = vrot.slane %v368_v30, 1  ;;  %v591_v61 = vrot.slane %v367_v27, 2  ;;  %v590_v50 = vrot.slane %v366_v26, 2  ;;  %v593_v4 = vrot.slane %v368_v30, 2  ;;  %v4678_v26 = vld [vmem:[#allocation14_spill] sm:$0xff]  ;;  %v4679_v27 = vld [vmem:[#allocation17_spill] sm:$0xff] }
  0x70   : > { %4671 = vst [vmem:[#allocation7_spill] sm:$0xff] %v3649_v17  ;;  %v587_v0 = vsel %vm420_vm2, %v585_v2, %v586_v40 }
  0x71   : > { %2392 = vrot.lane.b32.xlu1 %v3536_v11, %s2981_s7  ;;  %v589_v6 = vsel %vm420_vm2, %v586_v40, %v588_v21  ;;  %v592_v37 = vsel %vm501_vm3, %v590_v50, %v591_v61  ;;  %v4680_v40 = vld [vmem:[#allocation18_spill] sm:$0xff] }
  0x72   : > { %v3657_v39 = vpack.i.bf16 %v589_v6, %v587_v0  ;;  %v2896_v0 = vld [vmem:[%s4606_s1 + $0x10] ss:$0 sps:$4 sm:$0x33]  }
  0x73   : > { %2397 = vrot.lane.b32.xlu0 %v3542_v45, %s2981_s7  ;;  %2205 = vmatprep.subr.msk.bf16.mxu0 %vm1724_vm4, %v2896_v0 }
  0x74   : > { %2206 = vmatprep.subr.msk.bf16.mxu1 %vm1724_vm4, %v2896_v0 }
  0x75   : > { %2402 = vrot.lane.b32.xlu1 %v3553_v7, %s2981_s7 }
  0x77   : > { %2407 = vrot.lane.b32.xlu0 %v3564_v18, %s2981_s7 }
  0x79   : > { %2412 = vrot.lane.b32.xlu1 %v3568_v35, %s2981_s7 }
  0x7b   : > { %2417 = vrot.lane.b32.xlu0 %v2416_v29, %s2982_s8  ;;  %v594_v29 = vsel %vm501_vm3, %v591_v61, %v593_v4  ;;  %v2897_v61 = vld [vmem:[%s4606_s1 + $0x8] sm:$0xff]  }
  0x7d   : > { %2422 = vrot.lane.b32.xlu1 %v3580_v63, %s2982_s8 }
  0x7f   : > { %2427 = vrot.lane.b32.xlu0 %v3585_v14, %s2982_s8 }
  0x81   : > { %2432 = vrot.lane.b32.xlu1 %v3591_v12, %s2982_s8 }
  0x83   : > { %2437 = vrot.lane.b32.xlu0 %v3597_v31, %s2982_s8 }
  0x85   : > { %2442 = vrot.lane.b32.xlu1 %v3603_v41, %s2982_s8 }
  0x87   : > { %2447 = vrot.lane.b32.xlu0 %v3609_v42, %s2982_s8 }
  0x89   : > { %2452 = vrot.lane.b32.xlu1 %v2451_v19, %s2982_s8  ;;  %v3669_v19 = vpack.i.bf16 %v594_v29, %v592_v37 }
  0x8b   : > { %2457 = vrot.lane.b32.xlu0 %v2456_v47, %s2982_s8  ;;  %4676 = vst [vmem:[#allocation8_spill] sm:$0xff] %v3669_v19  ;;  %v4677_v47 = vld [vmem:[#allocation13_spill] sm:$0xff] }
  0x8d   : > { %2462 = vrot.lane.b32.xlu1 %v2461_v57, %s2982_s8 }
  0x8f   : > { %2467 = vrot.lane.b32.xlu0 %v2466_v5, %s2982_s8 }
  0x91   : > { %2472 = vrot.lane.b32.xlu1 %v3628_v13, %s2982_s8 }
  0x93   : > { %2477 = vrot.lane.b32.xlu0 %v3633_v15, %s2982_s8 }
  0x95   : > { %2482 = vrot.lane.b32.xlu1 %v3639_v20, %s2982_s8  ;;  %v3681_v2 = vpop.permute.xlu0 %2257 }
  0x97   : > { %2487 = vrot.lane.b32.xlu0 %v3645_v28, %s2982_s8 }
  0x99   : > { %2492 = vrot.lane.b32.xlu1 %v3649_v17, %s2982_s8 }
  0x9b   : > { %2497 = vrot.lane.b32.xlu0 %v4672_v1, %s2983_s9  ;;  %v1726_v1 = vsel %vm1724_vm4, %v2896_v0, 0 }
  0x9c   : > { %2162 = vmatpush3.bf16.msra.mxu0 %v1726_v1  ;;  %2202 = vmatpush3.bf16.msra.mxu1 %v1726_v1 }
  0x9d   : > { %2502 = vrot.lane.b32.xlu1 %v4673_v60, %s2983_s9  ;;  %2163 = vmatprep.subr.bf16.mxu0 %v2897_v61 }
  0x9e   : > { %2200 = vmatprep.subr.bf16.mxu1 %v2897_v61 }
  0x9f   : > { %2507 = vrot.lane.b32.xlu0 %v4674_v24, %s2983_s9 }
  0xa0   : > { %2164 = vmatpush3.bf16.msra.mxu0 %v2897_v61  ;;  %2203 = vmatpush3.bf16.msra.mxu1 %v2897_v61  ;;  %v4684_v61 = vld [vmem:[#allocation20_spill] sm:$0xff] }
  0xa1   : > { %2512 = vrot.lane.b32.xlu1 %v4675_v46, %s2983_s9 }
  0xa3   : > { %2517 = vrot.lane.b32.xlu0 %v4677_v47, %s2983_s9 }
  0xa5   : > { %2522 = vrot.lane.b32.xlu1 %v4678_v26, %s2983_s9 }
  0xa7   : > { %2527 = vrot.lane.b32.xlu0 %v4679_v27, %s2983_s9 }
  0xa9   : > { %2532 = vrot.lane.b32.xlu1 %v4680_v40, %s2983_s9 }
  0xab   : > { %2537 = vrot.lane.b32.xlu0 %v3451_v10, %s2984_s10 }
  0xad   : > { %2542 = vrot.lane.b32.xlu1 %v3532_v53, %s2984_s10 }
  0xaf   : > { %2547 = vrot.lane.b32.xlu0 %v3471_v59, %s2984_s10  ;;  %v3687_v30 = vpop.permute.xlu1 %2267 }
  0xb1   : > { %v3689_v21 = vpop.permute.xlu0 %2262  ;;  %2552 = vrot.lane.b32.xlu1 %v3534_v54, %s2984_s10 }
  0xb3   : > { %2557 = vrot.lane.b32.xlu0 %v3580_v63, %s2985_s13  ;;  %v3698_v10 = vpop.permute.xlu1 %2272 }
  0xb5   : > { %v3700_v6 = vpop.permute.xlu0 %2277  ;;  %2562 = vrot.lane.b32.xlu1 %v2461_v57, %s2985_s13  ;;  %v2898_v57 = vld [vmem:[%s4606_s1] sm:$0xff]  }
  0xb6   : > { %2165 = vmatprep.subr.bf16.mxu0 %v2898_v57  ;;  %2201 = vmatprep.subr.bf16.mxu1 %v2898_v57 }
  0xb7   : > { %2567 = vrot.lane.b32.xlu0 %v3585_v14, %s2985_s13  ;;  %v3708_v63 = vpop.permute.xlu1 %2282  ;;  %2166 = vmatpush3.bf16.msra.mxu0 %v2898_v57 }
  0xb8   : > { %2204 = vmatpush3.bf16.msra.mxu1 %v2898_v57 }
  0xb9   : > { %v3710_v50 = vpop.permute.xlu0 %2287  ;;  %2572 = vrot.lane.b32.xlu1 %v2466_v5, %s2985_s13 }
  0xbb   : > { %2577 = vrot.lane.b32.xlu0 %v4673_v60, %s2986_s27  ;;  %v3718_v4 = vpop.permute.xlu1 %2292  ;;  %v4682_v60 = vld [vmem:[#allocation19_spill] sm:$0xff] }
  0xbd   : > { %v3720_v14 = vpop.permute.xlu0 %2297  ;;  %2582 = vrot.lane.b32.xlu1 %v4680_v40, %s2986_s27 }
  0xbf   : > { %2587 = vrot.lane.b32.xlu0 %v4674_v24, %s2986_s27  ;;  %v3726_v5 = vpop.permute.xlu1 %2302 }
  0xc1   : > { %v3728_v37 = vpop.permute.xlu0 %2307  ;;  %2592 = vrot.lane.b32.xlu1 %v4682_v60, %s2986_s27 }
  0xc2   : > { %4681 = vst [vmem:[#allocation6_spill] sm:$0xff] %v3728_v37 }
  0xc3   : > { %2597 = vrot.lane.b32.xlu0 %v3471_v59, %s2987_s28  ;;  %v3734_v29 = vpop.permute.xlu1 %2312 }
  0xc4   : > { %4683 = vst [vmem:[#allocation10_spill] sm:$0xff] %v3734_v29 }
  0xc5   : > { %v3736_v0 = vpop.permute.xlu0 %2317  ;;  %2602 = vrot.lane.b32.xlu1 %v3534_v54, %s2987_s28 }
  0xc7   : > { %2607 = vrot.lane.b32.xlu0 %v3474_v34, %s2987_s28  ;;  %v3742_v24 = vpop.permute.xlu1 %2322 }
  0xc9   : > { %v2328_v40 = vpop.permute.xlu0 %2327  ;;  %2612 = vrot.lane.b32.xlu1 %v3536_v11, %s2987_s28 }
  0xca   : > { %v2329_v17 = vunpack.i.l.bf16 %v2328_v40 }
  0xcb   : > { %2617 = vrot.lane.b32.xlu0 %v4682_v60, %s2983_s9  ;;  %v2333_v59 = vpop.permute.xlu1 %2332 }
  0xcd   : > { %v3748_v1 = vpop.permute.xlu0 %2337  ;;  %2622 = vrot.lane.b32.xlu1 %v4684_v61, %s2983_s9 }
  0xcf   : > { %2627 = vrot.lane.b32.xlu0 %v3474_v34, %s2984_s10  ;;  %v3754_v54 = vpop.permute.xlu1 %2342 }
  0xd0   : > { %4685 = vst [vmem:[#allocation9_spill] sm:$0xff] %v3754_v54 }
  0xd1   : > { %v3756_v57 = vpop.permute.xlu0 %2347  ;;  %2632 = vrot.lane.b32.xlu1 %v3536_v11, %s2984_s10 }
  0xd3   : > { %2637 = vrot.lane.b32.xlu0 %v3476_v33, %s2984_s10  ;;  %v3762_v60 = vpop.permute.xlu1 %2352 }
  0xd5   : > { %v3764_v29 = vpop.permute.xlu0 %2357  ;;  %2642 = vrot.lane.b32.xlu1 %v3542_v45, %s2984_s10 }
  0xd7   : > { %2647 = vrot.lane.b32.xlu0 %v3591_v12, %s2985_s13  ;;  %v3770_v34 = vpop.permute.xlu1 %2362 }
  0xd9   : > { %v3772_v37 = vpop.permute.xlu0 %2367  ;;  %2652 = vrot.lane.b32.xlu1 %v3628_v13, %s2985_s13 }
  0xdb   : > { %2657 = vrot.lane.b32.xlu0 %v3597_v31, %s2985_s13  ;;  %v3778_v11 = vpop.permute.xlu1 %2372 }
  0xdd   : > { %v3780_v53 = vpop.permute.xlu0 %2377  ;;  %2662 = vrot.lane.b32.xlu1 %v3633_v15, %s2985_s13  ;;  %v2330_v15 = vunpack.i.h.bf16 %v2328_v40 }
  0xde   : > { %4686 = vst [vmem:[#allocation11_spill] sm:$0xff] %v3780_v53  ;;  %v1404_v53 = vsel %vm197_vm0, %v3391_v58, %v2329_v17 }
  0xdf   : > { %2667 = vrot.lane.b32.xlu0 %v4675_v46, %s2986_s27  ;;  %v3786_v12 = vpop.permute.xlu1 %2382  ;;  %v1405_v19 = vsel %vm197_vm0, %v3393_v44, %v2330_v15  ;;  %v2289_v15 = vunpack.i.l.bf16 %v3710_v50 }
  0xe0   : > { %4687 = vst [vmem:[#allocation12_spill] sm:$0xff] %v3786_v12  ;;  %v2334_v12 = vunpack.i.l.bf16 %v2333_v59 }
  0xe1   : > { %v3788_v27 = vpop.permute.xlu0 %2387  ;;  %2672 = vrot.lane.b32.xlu1 %v4684_v61, %s2986_s27 }
  0xe2   : > { %4688 = vst [vmem:[#allocation13_spill] sm:$0xff] %v3788_v27  ;;  %v2335_v27 = vunpack.i.h.bf16 %v2333_v59  ;;  %v1406_v44 = vsel %vm197_vm0, %v3402_v9, %v2334_v12  ;;  %v2279_v9 = vunpack.i.l.bf16 %v3700_v6  ;;  %v2284_v12 = vunpack.i.l.bf16 %v3708_v63 }
  0xe3   : > { %2677 = vrot.lane.b32.xlu0 %v4677_v47, %s2986_s27  ;;  %v3794_v31 = vpop.permute.xlu1 %2392 }
  0xe4   : > { %4689 = vst [vmem:[#allocation14_spill] sm:$0xff] %v3794_v31 }
  0xe5   : > { %v3796_v13 = vpop.permute.xlu0 %2397  ;;  %2682 = vrot.lane.b32.xlu1 %v3421_v22, %s2986_s27 }
  0xe7   : > { %2687 = vrot.lane.b32.xlu0 %v3476_v33, %s2987_s28  ;;  %v3802_v46 = vpop.permute.xlu1 %2402 }
  0xe9   : > { %v2408_v61 = vpop.permute.xlu0 %2407  ;;  %2692 = vrot.lane.b32.xlu1 %v3542_v45, %s2987_s28 }
  0xea   : > { %v2410_v47 = vunpack.i.h.bf16 %v2408_v61  ;;  %v2409_v31 = vunpack.i.l.bf16 %v2408_v61  ;;  %v1407_v61 = vsel %vm197_vm0, %v3404_v23, %v2335_v27  ;;  %v2280_v23 = vunpack.i.h.bf16 %v3700_v6 }
  0xeb   : > { %2697 = vrot.lane.b32.xlu0 %v3501_v32, %s2987_s28  ;;  %v2413_v33 = vpop.permute.xlu1 %2412  ;;  %v2285_v27 = vunpack.i.h.bf16 %v3708_v63 }
  0xec   : > { %v3813_v40 = vsel %vm1408_vm5, %v1404_v53, %v2409_v31  ;;  %v3816_v59 = vsel %vm1408_vm5, %v1405_v19, %v2410_v47  ;;  %v2415_v45 = vunpack.i.h.bf16 %v2413_v33  ;;  %v2414_v54 = vunpack.i.l.bf16 %v2413_v33 }
  0xed   : > { %v3822_v58 = vpop.permute.xlu0 %2417  ;;  %2702 = vrot.lane.b32.xlu1 %v3553_v7, %s2987_s28  ;;  %v2290_v31 = vunpack.i.h.bf16 %v3710_v50  ;;  %v1385_v63 = vsel %vm197_vm0, %v3207_v49, %v2280_v23  ;;  %v1384_v50 = vsel %vm197_vm0, %v3205_v48, %v2279_v9  ;;  %v1387_v33 = vsel %vm197_vm0, %v3218_v56, %v2285_v27 }
  0xee   : > { %v3827_v17 = vsel %vm1408_vm5, %v1407_v61, %v2415_v45  ;;  %v3830_v53 = vsel %vm1408_vm5, %v1406_v44, %v2414_v54  ;;  %v2359_v54 = vunpack.i.l.bf16 %v3764_v29  ;;  %v1386_v45 = vsel %vm197_vm0, %v3216_v55, %v2284_v12 }
  0xef   : > { %2707 = vrot.lane.b32.xlu0 %v3421_v22, %s2983_s9  ;;  %v3834_v19 = vpop.permute.xlu1 %2422  ;;  %v2360_v22 = vunpack.i.h.bf16 %v3764_v29  ;;  %v1389_v29 = vsel %vm197_vm0, %v3235_v3, %v2290_v31  ;;  %v2365_v61 = vunpack.i.h.bf16 %v3770_v34  ;;  %v2364_v44 = vunpack.i.l.bf16 %v3770_v34 }
  0xf0   : > { %v2295_v48 = vunpack.i.h.bf16 %v3718_v4  ;;  %v2294_v56 = vunpack.i.l.bf16 %v3718_v4  ;;  %v1417_v9 = vsel %vm1408_vm5, %v1384_v50, %v2359_v54  ;;  %v2369_v27 = vunpack.i.l.bf16 %v3772_v37 }
  0xf1   : > { %v3842_v47 = vpop.permute.xlu0 %2427  ;;  %2712 = vrot.lane.b32.xlu1 %v3432_v16, %s2983_s9  ;;  %v1418_v3 = vsel %vm1408_vm5, %v1385_v63, %v2360_v22  ;;  %v1419_v22 = vsel %vm1408_vm5, %v1386_v45, %v2364_v44  ;;  %v2375_v54 = vunpack.i.h.bf16 %v3778_v11  ;;  %v2900_v45 = vld [vmem:[#allocation2 + $0xa8] sm:$0xff] }
  0xf3   : > { %2717 = vrot.lane.b32.xlu0 %v3501_v32, %s2984_s10  ;;  %v3850_v6 = vpop.permute.xlu1 %2432  ;;  %v1388_v32 = vsel %vm197_vm0, %v3226_v62, %v2289_v15  ;;  %v2370_v62 = vunpack.i.h.bf16 %v3772_v37  ;;  %v1420_v15 = vsel %vm1408_vm5, %v1387_v33, %v2365_v61  ;;  %v2374_v37 = vunpack.i.l.bf16 %v3778_v11 }
  0xf4   : > { %v1390_v61 = vsel %vm197_vm0, %v2900_v45, %v2294_v56  ;;  %v1421_v11 = vsel %vm1408_vm5, %v1388_v32, %v2369_v27  ;;  %v2320_v27 = vunpack.i.h.bf16 %v3736_v0 }
  0xf5   : > { %v2438_v49 = vpop.permute.xlu0 %2437  ;;  %2722 = vrot.lane.b32.xlu1 %v3553_v7, %s2984_s10  ;;  %v1422_v44 = vsel %vm1408_vm5, %v1389_v29, %v2370_v62  ;;  %v1423_v56 = vsel %vm1408_vm5, %v1390_v61, %v2374_v37  ;;  %v2324_v37 = vunpack.i.l.bf16 %v3742_v24 }
  0xf6   : > { %v2440_v23 = vunpack.i.h.bf16 %v2438_v49  ;;  %v2439_v55 = vunpack.i.l.bf16 %v2438_v49 }
  0xf7   : > { %2727 = vrot.lane.b32.xlu0 %v3504_v36, %s2984_s10  ;;  %v2443_v34 = vpop.permute.xlu1 %2442  ;;  %v1402_v45 = vsel %vm197_vm0, %v3373_v38, %v2324_v37  ;;  %v2269_v37 = vunpack.i.l.bf16 %v3687_v30 }
  0xf8   : > { %v3877_v7 = vsel %vm1441_vm6, %v1417_v9, %v2439_v55  ;;  %v3880_v12 = vsel %vm1441_vm6, %v1418_v3, %v2440_v23  ;;  %v2445_v4 = vunpack.i.h.bf16 %v2443_v34  ;;  %v2444_v31 = vunpack.i.l.bf16 %v2443_v34  ;;  %v2899_v9 = vld [vmem:[#allocation2 + $0xb0] sm:$0xff] }
  0xf9   : > { %v2448_v63 = vpop.permute.xlu0 %2447  ;;  %2732 = vrot.lane.b32.xlu1 %v3564_v18, %s2984_s10  ;;  %v1391_v33 = vsel %vm197_vm0, %v2899_v9, %v2295_v48 }
  0xfa   : > { %v3889_v50 = vsel %vm1441_vm6, %v1419_v22, %v2444_v31  ;;  %v3892_v49 = vsel %vm1441_vm6, %v1420_v15, %v2445_v4  ;;  %v2450_v23 = vunpack.i.h.bf16 %v2448_v63  ;;  %v2449_v55 = vunpack.i.l.bf16 %v2448_v63 }
  0xfb   : > { %2737 = vrot.lane.b32.xlu0 %v3603_v41, %s2985_s13  ;;  %v2453_v3 = vpop.permute.xlu1 %2452  ;;  %v1424_v48 = vsel %vm1408_vm5, %v1391_v33, %v2375_v54  ;;  %v2325_v54 = vunpack.i.h.bf16 %v3742_v24  ;;  %v2400_v63 = vunpack.i.h.bf16 %v3796_v13 }
  0xfc   : > { %v3901_v34 = vsel %vm1441_vm6, %v1421_v11, %v2449_v55  ;;  %v3904_v4 = vsel %vm1441_vm6, %v1422_v44, %v2450_v23  ;;  %v2455_v31 = vunpack.i.h.bf16 %v2453_v3  ;;  %v2454_v15 = vunpack.i.l.bf16 %v2453_v3 }
  0xfd   : > { %4690 = vst [vmem:[#allocation18_spill] sm:$0xff] %v3901_v34  ;;  %4691 = vst [vmem:[#allocation19_spill] sm:$0xff] %v3904_v4  ;;  %v3908_v22 = vpop.permute.xlu0 %2457  ;;  %2742 = vrot.lane.b32.xlu1 %v3639_v20, %s2985_s13  ;;  %v2319_v20 = vunpack.i.l.bf16 %v3736_v0  ;;  %v2399_v23 = vunpack.i.l.bf16 %v3796_v13  ;;  %v2405_v55 = vunpack.i.h.bf16 %v3802_v46  ;;  %v1401_v0 = vsel %vm197_vm0, %v3366_v25, %v2320_v27 }
  0xfe   : > { %v3913_v41 = vsel %vm1441_vm6, %v1423_v56, %v2454_v15  ;;  %v3916_v29 = vsel %vm1441_vm6, %v1424_v48, %v2455_v31  ;;  %v1434_v61 = vsel %vm1408_vm5, %v1401_v0, %v2400_v63  ;;  %v4695_v15 = vld [vmem:[#allocation21_spill] sm:$0xff]  ;;  %v2275_v0 = vunpack.i.h.bf16 %v3698_v10 }
  0xff   : > { %4692 = vst [vmem:[#allocation20_spill] sm:$0xff] %v3913_v41  ;;  %4693 = vst [vmem:[#allocation23_spill] sm:$0xff] %v3916_v29  ;;  %2747 = vrot.lane.b32.xlu0 %v3609_v42, %s2985_s13  ;;  %v3920_v32 = vpop.permute.xlu1 %2462  ;;  %v1400_v24 = vsel %vm197_vm0, %v3357_v8, %v2319_v20  ;;  %v2420_v34 = vunpack.i.h.bf16 %v3822_v58 }
 0x101   : > { %v3922_v62 = vpop.permute.xlu0 %2467  ;;  %2752 = vrot.lane.b32.xlu1 %v3645_v28, %s2985_s13  ;;  %v2404_v28 = vunpack.i.l.bf16 %v3802_v46  ;;  %v1433_v46 = vsel %vm1408_vm5, %v1400_v24, %v2399_v23  ;;  %v2274_v24 = vunpack.i.l.bf16 %v3698_v10  ;;  %v2354_v10 = vunpack.i.l.bf16 %v3762_v60 }
 0x103   : > { %2757 = vrot.lane.b32.xlu0 %v4678_v26, %s2986_s27  ;;  %v3934_v42 = vpop.permute.xlu1 %2472  ;;  %v1403_v26 = vsel %vm197_vm0, %v3375_v43, %v2325_v54  ;;  %v1435_v38 = vsel %vm1408_vm5, %v1402_v45, %v2404_v28  ;;  %v2270_v54 = vunpack.i.h.bf16 %v3687_v30  ;;  %v4004_v45 = vld [vmem:[#allocation2 + $0x1a0] sm:$0xff] }
 0x104   : > { %v1436_v43 = vsel %vm1408_vm5, %v1403_v26, %v2405_v55  ;;  %v2430_v26 = vunpack.i.h.bf16 %v3842_v47 }
 0x105   : > { %v2478_v9 = vpop.permute.xlu0 %2477  ;;  %2762 = vrot.lane.b32.xlu1 %v3432_v16, %s2986_s27  ;;  %v4694_v16 = vld [vmem:[#allocation15_spill] sm:$0xff] }
 0x106   : > { %v2480_v13 = vunpack.i.h.bf16 %v2478_v9  ;;  %v2479_v33 = vunpack.i.l.bf16 %v2478_v9 }
 0x107   : > { %2767 = vrot.lane.b32.xlu0 %v4694_v16, %s2986_s27  ;;  %v2483_v11 = vpop.permute.xlu1 %2482 }
 0x108   : > { %v3953_v25 = vsel %vm1441_vm6, %v1433_v46, %v2479_v33  ;;  %v3956_v8 = vsel %vm1441_vm6, %v1434_v61, %v2480_v13  ;;  %v2485_v44 = vunpack.i.h.bf16 %v2483_v11  ;;  %v2484_v3 = vunpack.i.l.bf16 %v2483_v11 }
 0x109   : > { %v2488_v31 = vpop.permute.xlu0 %2487  ;;  %2772 = vrot.lane.b32.xlu1 %v4695_v15, %s2986_s27  ;;  %v2355_v33 = vunpack.i.h.bf16 %v3762_v60  ;;  %v599_v11 = vrot.slane %v4004_v45, 1  ;;  %v2903_v60 = vld [vmem:[#allocation2 + $0x50] sm:$0xff] }
 0x10a   : > { %v3963_v48 = vsel %vm1441_vm6, %v1435_v38, %v2484_v3  ;;  %v3966_v56 = vsel %vm1441_vm6, %v1436_v43, %v2485_v44  ;;  %v2490_v27 = vunpack.i.h.bf16 %v2488_v31  ;;  %v2489_v20 = vunpack.i.l.bf16 %v2488_v31  ;;  %v2904_v3 = vld [vmem:[#allocation2 + $0x48] sm:$0xff] }
 0x10b   : > { %2777 = vrot.lane.b32.xlu0 %v3504_v36, %s2987_s28  ;;  %v2493_v63 = vpop.permute.xlu1 %2492  ;;  %v2350_v36 = vunpack.i.h.bf16 %v3756_v57  ;;  %v1383_v44 = vsel %vm197_vm0, %v2903_v60, %v2275_v0  ;;  %v2435_v43 = vunpack.i.h.bf16 %v3850_v6  ;;  %v2434_v38 = vunpack.i.l.bf16 %v3850_v6 }
 0x10c   : > { %v3974_v23 = vsel %vm1441_vm6, %v3813_v40, %v2489_v20  ;;  %v3978_v55 = vsel %vm1441_vm6, %v3816_v59, %v2490_v27  ;;  %v2495_v28 = vunpack.i.h.bf16 %v2493_v63  ;;  %v2494_v9 = vunpack.i.l.bf16 %v2493_v63  ;;  %v371_v63 = vld [vmem:[#allocation2 + $0x1a8] sm:$0x3] }
 0x10d   : > { %4696 = vst [vmem:[#allocation15_spill] sm:$0xff] %v3974_v23  ;;  %4697 = vst [vmem:[#allocation21_spill] sm:$0xff] %v3978_v55  ;;  %v3982_v30 = vpop.permute.xlu0 %2497  ;;  %2782 = vrot.lane.b32.xlu1 %v3564_v18, %s2987_s28  ;;  %v2349_v40 = vunpack.i.l.bf16 %v3756_v57  ;;  %v2429_v18 = vunpack.i.l.bf16 %v3842_v47  ;;  %v1382_v47 = vsel %vm197_vm0, %v2904_v3, %v2274_v24  ;;  %v4706_v55 = vld [vmem:[#allocation12_spill] sm:$0xff] }
 0x10e   : > { %v3990_v13 = vsel %vm1441_vm6, %v3830_v53, %v2494_v9  ;;  %v3994_v59 = vsel %vm1441_vm6, %v3827_v17, %v2495_v28  ;;  %v2901_v53 = vld [vmem:[#allocation2 + $0x38] sm:$0xff]  ;;  %v2902_v17 = vld [vmem:[#allocation2 + $0x30] sm:$0xff]  ;;  %v1416_v28 = vsel %vm1408_vm5, %v1383_v44, %v2355_v33  ;;  %v1415_v9 = vsel %vm1408_vm5, %v1382_v47, %v2354_v10 }
 0x10f   : > { %4698 = vst [vmem:[#allocation24_spill] sm:$0xff] %v3990_v13  ;;  %4699 = vst [vmem:[#allocation25_spill] sm:$0xff] %v3994_v59  ;;  %2787 = vrot.lane.b32.xlu0 %v3511_v52, %s2987_s28  ;;  %v4002_v57 = vpop.permute.xlu1 %2502  ;;  %v1381_v46 = vsel %vm197_vm0, %v2901_v53, %v2270_v54  ;;  %v1380_v61 = vsel %vm197_vm0, %v2902_v17, %v2269_v37  ;;  %v4029_v17 = vld [vmem:[#allocation2 + $0x198] sm:$0xff]  ;;  %v1448_v33 = vsel %vm1441_vm6, %v1415_v9, %v2434_v38  ;;  %v4700_v38 = vld [vmem:[#allocation16_spill] sm:$0xff] }
 0x110   : > { %v1414_v27 = vsel %vm1408_vm5, %v1381_v46, %v2350_v36  ;;  %v1413_v20 = vsel %vm1408_vm5, %v1380_v61, %v2349_v40  ;;  %v1449_v10 = vsel %vm1441_vm6, %v1416_v28, %v2435_v43  ;;  %v2260_v47 = vunpack.i.h.bf16 %v3681_v2 }
 0x111   : > { %v2508_v31 = vpop.permute.xlu0 %2507  ;;  %2792 = vrot.lane.b32.xlu1 %v3568_v35, %s2987_s28  ;;  %v1446_v0 = vsel %vm1441_vm6, %v1413_v20, %v2429_v18  ;;  %v1447_v24 = vsel %vm1441_vm6, %v1414_v27, %v2430_v26  ;;  %v601_v26 = vrot.slane %v371_v63, 1  ;;  %v604_v28 = vrot.slane %v4004_v45, 2 }
 0x112   : > { %v2510_v54 = vunpack.i.h.bf16 %v2508_v31  ;;  %v2509_v37 = vunpack.i.l.bf16 %v2508_v31  ;;  %v603_v9 = vrot.slane %v4029_v17, 2  ;;  %v2385_v23 = vunpack.i.h.bf16 %v4706_v55 }
 0x113   : > { %2797 = vrot.lane.b32.xlu0 %v4694_v16, %s2983_s9  ;;  %v2513_v6 = vpop.permute.xlu1 %2512  ;;  %v598_v16 = vrot.slane %v4029_v17, 1 }
 0x114   : > { %v4024_v53 = vsel %vm1474_vm7, %v1446_v0, %v2509_v37  ;;  %v4027_v36 = vsel %vm1474_vm7, %v1447_v24, %v2510_v54  ;;  %v2515_v40 = vunpack.i.h.bf16 %v2513_v6  ;;  %v2514_v46 = vunpack.i.l.bf16 %v2513_v6 }
 0x115   : > { %v2518_v18 = vpop.permute.xlu0 %2517  ;;  %2802 = vrot.lane.b32.xlu1 %v4695_v15, %s2983_s9  ;;  %v2259_v54 = vunpack.i.l.bf16 %v3681_v2  ;;  %v4072_v2 = vsel %vm420_vm2, %v599_v11, %v601_v26  ;;  %v606_v24 = vrot.slane %v371_v63, 2  ;;  %v2265_v6 = vunpack.i.h.bf16 %v3689_v21  ;;  %v2910_v26 = vld [vmem:[#allocation2] sm:$0xff] }
 0x116   : > { %v4037_v61 = vsel %vm1474_vm7, %v1448_v33, %v2514_v46  ;;  %v4040_v60 = vsel %vm1474_vm7, %v1449_v10, %v2515_v40  ;;  %v2520_v44 = vunpack.i.h.bf16 %v2518_v18  ;;  %v2519_v3 = vunpack.i.l.bf16 %v2518_v18  ;;  %v2905_v33 = vld [vmem:[#allocation2 + $0xc0] sm:$0xff]  ;;  %v2907_v18 = vld [vmem:[#allocation2 + $0x8] sm:$0xff] }
 0x117   : > { %2807 = vrot.lane.b32.xlu0 %v4700_v38, %s2983_s9  ;;  %v2523_v43 = vpop.permute.xlu1 %2522  ;;  %v2264_v40 = vunpack.i.l.bf16 %v3689_v21  ;;  %v1376_v21 = vsel %vm197_vm0, %v2910_v26, %v2259_v54  ;;  %v2912_v26 = vld [vmem:[#allocation2 + $0x18] sm:$0xff] }
 0x118   : > { %v4047_v15 = vsel %vm1474_vm7, %v3877_v7, %v2519_v3  ;;  %v4051_v31 = vsel %vm1474_vm7, %v3880_v12, %v2520_v44  ;;  %v2525_v27 = vunpack.i.h.bf16 %v2523_v43  ;;  %v2524_v20 = vunpack.i.l.bf16 %v2523_v43  ;;  %v2909_v44 = vld [vmem:[#allocation2 + $0xe0] sm:$0xff] }
 0x119   : > { %v4054_v37 = vpop.permute.xlu0 %2527  ;;  %2812 = vrot.lane.b32.xlu1 %v3657_v39, %s2983_s9  ;;  %v4061_v7 = vsel %vm420_vm2, %v598_v16, %v599_v11  ;;  %v2908_v16 = vld [vmem:[#allocation2 + $0xd8] sm:$0xff]  ;;  %v2300_v43 = vunpack.i.h.bf16 %v3720_v14  ;;  %v1378_v63 = vsel %vm197_vm0, %v2912_v26, %v2264_v40  ;;  %s2111_s9 = sshll.u32 %s188_s29, 8 }
 0x11a   : > { %v4065_v12 = vsel %vm1474_vm7, %v3889_v50, %v2524_v20  ;;  %v4069_v0 = vsel %vm1474_vm7, %v3892_v49, %v2525_v27  ;;  %v2906_v50 = vld [vmem:[#allocation2 + $0xc8] sm:$0xff]  ;;  %v1377_v49 = vsel %vm197_vm0, %v2907_v18, %v2260_v47  ;;  %v2846_v11 = vpack.i.bf16 %v2909_v44, %v2908_v16  ;;  %v2911_v18 = vld [vmem:[#allocation2 + $0x20] sm:$0xff] }
 0x11b   : > { %4701 = vst [vmem:[#allocation16_spill] sm:$0xff] %v4065_v12  ;;  %4702 = vst [vmem:[#allocation26_spill] sm:$0xff] %v4069_v0  ;;  %2817 = vrot.lane.b32.xlu0 %v3511_v52, %s2984_s10  ;;  %v4078_v46 = vpop.permute.xlu1 %2532  ;;  %v2836_v10 = vpack.i.bf16 %v2906_v50, %v2905_v33  ;;  %v2299_v47 = vunpack.i.l.bf16 %v3720_v14  ;;  %v4093_v27 = vsel %vm501_vm3, %v603_v9, %v604_v28  ;;  %v2304_v52 = vunpack.i.l.bf16 %v3726_v5 }
 0x11c   : > { %v4096_v20 = vsel %vm501_vm3, %v604_v28, %v606_v24  ;;  %v1379_v54 = vsel %vm197_vm0, %v2911_v18, %v2265_v6  ;;  %v2340_v9 = vunpack.i.h.bf16 %v3748_v1  ;;  %v2339_v28 = vunpack.i.l.bf16 %v3748_v1  ;;  %v4703_v24 = vld [vmem:[#allocation9_spill] sm:$0xff]  ;;  %v4704_v18 = vld [vmem:[#allocation11_spill] sm:$0xff] }
 0x11d   : > { %v4084_v3 = vpop.permute.xlu0 %2537  ;;  %2822 = vrot.lane.b32.xlu1 %v3568_v35, %s2984_s10  ;;  %v2305_v35 = vunpack.i.h.bf16 %v3726_v5  ;;  %v2345_v59 = vunpack.i.h.bf16 %v4703_v24  ;;  %v2344_v6 = vunpack.i.l.bf16 %v4703_v24  ;;  %v2380_v13 = vunpack.i.h.bf16 %v4704_v18  ;;  %v4705_v5 = vld [vmem:[#allocation8_spill] sm:$0xff] }
 0x11e   : > { %v2379_v40 = vunpack.i.l.bf16 %v4704_v18  ;;  %v2891_v41 = vpack.i.bf16 %v4096_v20, %v4093_v27  ;;  %v1393_v29 = vsel %vm197_vm0, %v2906_v50, %v2300_v43  ;;  %v1392_v1 = vsel %vm197_vm0, %v2905_v33, %v2299_v47  ;;  %v4707_v47 = vld [vmem:[#allocation7_spill] sm:$0xff] }
 0x11f   : > { %2827 = vrot.lane.b32.xlu0 %v3530_v51, %s2984_s10  ;;  %v4104_v14 = vpop.permute.xlu1 %2542  ;;  %v2384_v24 = vunpack.i.l.bf16 %v4706_v55  ;;  %v1395_v4 = vsel %vm197_vm0, %v2909_v44, %v2305_v35  ;;  %v1394_v18 = vsel %vm197_vm0, %v2908_v16, %v2304_v52  ;;  %v2419_v12 = vunpack.i.l.bf16 %v3822_v58 }
 0x120   : > { %v1410_v50 = vsel %vm1408_vm5, %v1377_v49, %v2340_v9  ;;  %v1409_v33 = vsel %vm1408_vm5, %v1376_v21, %v2339_v28  ;;  %v1411_v43 = vsel %vm1408_vm5, %v1378_v63, %v2344_v6  ;;  %v1412_v55 = vsel %vm1408_vm5, %v1379_v54, %v2345_v59 }
 0x121   : > { %v4112_v26 = vpop.permute.xlu0 %2547  ;;  %2832 = vrot.lane.b32.xlu1 %v4705_v5, %s2984_s10  ;;  %v1425_v44 = vsel %vm1408_vm5, %v1392_v1, %v2379_v40  ;;  %v1426_v16 = vsel %vm1408_vm5, %v1393_v29, %v2380_v13  ;;  %v2425_v52 = vunpack.i.h.bf16 %v3834_v19  ;;  %v2424_v58 = vunpack.i.l.bf16 %v3834_v19  ;;  %s4463_s10 = scalar_lea.vmem [#allocation3], %s2111_s9 }
 0x122   : > { %v1428_v49 = vsel %vm1408_vm5, %v1395_v4, %v2385_v23  ;;  %v1427_v63 = vsel %vm1408_vm5, %v1394_v18, %v2384_v24  ;;  %v2460_v59 = vunpack.i.h.bf16 %v3908_v22  ;;  %v2459_v21 = vunpack.i.l.bf16 %v3908_v22  ;;  %s2045_s12 = sshll.u32 %s4463_s10, 4  ;;  %s4558_s12 = int_to_ptr.vmem [resolvable:$true] %s2045_s12 }
 0x123   : > { %2837 = vrot.lane.b32.xlu0 %v2836_v10, %s2985_s13  ;;  %v4127_v0 = vpop.permute.xlu1 %2552  ;;  %v1442_v54 = vsel %vm1441_vm6, %v1409_v33, %v2419_v12  ;;  %v1443_v29 = vsel %vm1441_vm6, %v1410_v50, %v2420_v34  ;;  %v2465_v13 = vunpack.i.h.bf16 %v3920_v32  ;;  %v2464_v19 = vunpack.i.l.bf16 %v3920_v32  ;;  %s2917_s22 = scalar_lea.vmem %s4558_s12, 4096 }
 0x124   : > { %v2500_v4 = vunpack.i.h.bf16 %v3982_v30  ;;  %v2499_v23 = vunpack.i.l.bf16 %v3982_v30  ;;  %v2505_v9 = vunpack.i.h.bf16 %v4002_v57  ;;  %v2504_v22 = vunpack.i.l.bf16 %v4002_v57  ;;  %p2918_p11 = scmp.ne.s32.totalorder %s4558_s12, %s2917_s22 }
 0x125   : > { %v4137_v10 = vpop.permute.xlu0 %2557  ;;  %2842 = vrot.lane.b32.xlu1 %v4707_v47, %s2985_s13  ;;  %v1444_v12 = vsel %vm1441_vm6, %v1411_v43, %v2424_v58  ;;  %v1445_v34 = vsel %vm1441_vm6, %v1412_v55, %v2425_v52  ;;  %v2530_v28 = vunpack.i.h.bf16 %v4054_v37  ;;  %v2529_v32 = vunpack.i.l.bf16 %v4054_v37 }
 0x126   : > { %v4708_v6 = vpack.i.bf16 %v4004_v45, %v4029_v17  ;;  %v1458_v30 = vsel %vm1441_vm6, %v1425_v44, %v2459_v21  ;;  %v1459_v40 = vsel %vm1441_vm6, %v1426_v16, %v2460_v59  ;;  %v2535_v57 = vunpack.i.h.bf16 %v4078_v46  ;;  %p2919_p12 = pnand %p2918_p11, %p3053_p5 }
 0x127   : > { %2847 = vrot.lane.b32.xlu0 %v2846_v11, %s2985_s13  ;;  %v4150_v35 = vpop.permute.xlu1 %2562  ;;  %v2534_v1 = vunpack.i.l.bf16 %v4078_v46  ;;  %v1460_v24 = vsel %vm1441_vm6, %v1427_v63, %v2464_v19  ;;  %v1461_v18 = vsel %vm1441_vm6, %v1428_v49, %v2465_v13  ;;  %v2540_v37 = vunpack.i.h.bf16 %v4084_v3 }
 0x128   : > { %v2539_v50 = vunpack.i.l.bf16 %v4084_v3  ;;  %v1475_v17 = vsel %vm1474_vm7, %v1442_v54, %v2499_v23  ;;  %v1476_v33 = vsel %vm1474_vm7, %v1443_v29, %v2500_v4  ;;  %v1477_v46 = vsel %vm1474_vm7, %v1444_v12, %v2504_v22  ;;  %v4709_v54 = vld [vmem:[#allocation17_spill] sm:$0xff]  ;;  %p2920_p13 = pneg %p2919_p12 }
 0x129   : > { %v2568_v11 = vpop.permute.xlu0 %2567  ;;  %2852 = vrot.lane.b32.xlu1 %v4708_v6, %s2985_s13  ;;  %v1478_v43 = vsel %vm1474_vm7, %v1445_v34, %v2505_v9  ;;  %v1491_v55 = vsel %vm1474_vm7, %v1458_v30, %v2529_v32  ;;  %v1492_v44 = vsel %vm1474_vm7, %v1459_v40, %v2530_v28  ;;  %v2545_v3 = vunpack.i.h.bf16 %v4104_v14 }
 0x12a   : > { %v2544_v16 = vunpack.i.l.bf16 %v4104_v14  ;;  %v1493_v52 = vsel %vm1474_vm7, %v1460_v24, %v2534_v1  ;;  %v1494_v58 = vsel %vm1474_vm7, %v1461_v18, %v2535_v57  ;;  %v2550_v47 = vunpack.i.h.bf16 %v4112_v26 }
 0x12b   : > { %2857 = vrot.lane.b32.xlu0 %v4700_v38, %s2986_s27  ;;  %v4174_v45 = vpop.permute.xlu1 %2572  ;;  %v2549_v49 = vunpack.i.l.bf16 %v4112_v26  ;;  %v1508_v63 = vsel %vm1507_vm8, %v1475_v17, %v2539_v50  ;;  %v1509_v59 = vsel %vm1507_vm8, %v1476_v33, %v2540_v37  ;;  %v2555_v21 = vunpack.i.h.bf16 %v4127_v0 }
 0x12c   : > { %v2554_v14 = vunpack.i.l.bf16 %v4127_v0  ;;  %v2560_v29 = vunpack.i.h.bf16 %v4137_v10  ;;  %v2559_v13 = vunpack.i.l.bf16 %v4137_v10  ;;  %v2565_v19 = vunpack.i.h.bf16 %v4150_v35 }
 0x12d   : > { %v2578_v38 = vpop.permute.xlu0 %2577  ;;  %2862 = vrot.lane.b32.xlu1 %v3657_v39, %s2986_s27  ;;  %v2564_v26 = vunpack.i.l.bf16 %v4150_v35  ;;  %v1524_v4 = vsel %vm1507_vm8, %v1491_v55, %v2544_v16  ;;  %v1525_v23 = vsel %vm1507_vm8, %v1492_v44, %v2545_v3  ;;  %v2570_v9 = vunpack.i.h.bf16 %v2568_v11  ;;  %v4711_v3 = vld [vmem:[#allocation22_spill] sm:$0xff] }
 0x12e   : > { %v2569_v22 = vunpack.i.l.bf16 %v2568_v11  ;;  %v4710_v12 = vpack.i.bf16 %v4072_v2, %v4061_v7  ;;  %v1510_v34 = vsel %vm1507_vm8, %v1477_v46, %v2549_v49  ;;  %v1511_v10 = vsel %vm1507_vm8, %v1478_v43, %v2550_v47 }
 0x12f   : > { %2867 = vrot.lane.b32.xlu0 %v4709_v54, %s2986_s27  ;;  %v2583_v39 = vpop.permute.xlu1 %2582  ;;  %v2574_v28 = vunpack.i.l.bf16 %v4174_v45  ;;  %v2579_v35 = vunpack.i.l.bf16 %v2578_v38  ;;  %v1526_v32 = vsel %vm1507_vm8, %v1493_v52, %v2554_v14  ;;  %v1527_v6 = vsel %vm1507_vm8, %v1494_v58, %v2555_v21 }
 0x130   : > { %v2580_v30 = vunpack.i.h.bf16 %v2578_v38  ;;  %v2584_v40 = vunpack.i.l.bf16 %v2583_v39  ;;  %v1541_v7 = vsel %vm1540_vm9, %v1508_v63, %v2559_v13  ;;  %v1542_v2 = vsel %vm1540_vm9, %v1509_v59, %v2560_v29 }
 0x131   : > { %v2588_v0 = vpop.permute.xlu0 %2587  ;;  %2872 = vrot.lane.b32.xlu1 %v4710_v12, %s2986_s27  ;;  %v1557_v57 = vsel %vm1540_vm9, %v1524_v4, %v2564_v26  ;;  %v1558_v1 = vsel %vm1540_vm9, %v1525_v23, %v2565_v19  ;;  %v1543_v24 = vsel %vm1540_vm9, %v1510_v34, %v2569_v22  ;;  %v1544_v18 = vsel %vm1540_vm9, %v1511_v10, %v2570_v9  ;;  %s2921_s27 = sshll.u32 %s2988_s23, 4  ;;  %s2922_s27 = int_to_ptr.vmem [resolvable:$false] %s2921_s27 }
 0x132   : > { %v2575_v37 = vunpack.i.h.bf16 %v4174_v45  ;;  %v2585_v50 = vunpack.i.h.bf16 %v2583_v39  ;;  %v1574_v43 = vsel %vm1573_vm10, %v1541_v7, %v2579_v35  ;;  %v2590_v55 = vunpack.i.h.bf16 %v2588_v0  ;;  %v4712_v7 = vld [vmem:[#allocation6_spill] sm:$0xff]  ;;  %p2924_p0 = scmp.lt.s32.totalorder %s4558_s12, %s2922_s27 }
 0x133   : > { %2877 = vrot.lane.b32.xlu0 %v3530_v51, %s2987_s28  ;;  %v2593_v11 = vpop.permute.xlu1 %2592  ;;  %v1559_v51 = vsel %vm1540_vm9, %v1526_v32, %v2574_v28  ;;  %v2589_v44 = vunpack.i.l.bf16 %v2588_v0  ;;  %v1575_v38 = vsel %vm1573_vm10, %v1542_v2, %v2580_v30  ;;  %v1590_v45 = vsel %vm1573_vm10, %v1557_v57, %v2584_v40 }
 0x134   : > { %v2595_v49 = vunpack.i.h.bf16 %v2593_v11  ;;  %v2594_v63 = vunpack.i.l.bf16 %v2593_v11  ;;  %v1591_v14 = vsel %vm1573_vm10, %v1558_v1, %v2585_v50  ;;  %v1560_v19 = vsel %vm1540_vm9, %v1527_v6, %v2575_v37 }
 0x135   : > { %v2598_v17 = vpop.permute.xlu0 %2597  ;;  %2882 = vrot.lane.b32.xlu1 %v4705_v5, %s2987_s28  ;;  %v1576_v26 = vsel %vm1573_vm10, %v1543_v24, %v2589_v44  ;;  %v1577_v4 = vsel %vm1573_vm10, %v1544_v18, %v2590_v55  ;;  %v2310_v2 = vunpack.i.h.bf16 %v4712_v7  ;;  %v2309_v57 = vunpack.i.l.bf16 %v4712_v7  ;;  %v4713_v24 = vld [vmem:[#allocation10_spill] sm:$0xff] }
 0x136   : > { %v2600_v33 = vunpack.i.h.bf16 %v2598_v17  ;;  %v2599_v46 = vunpack.i.l.bf16 %v2598_v17  ;;  %v1592_v0 = vsel %vm1573_vm10, %v1559_v51, %v2594_v63  ;;  %v1593_v12 = vsel %vm1573_vm10, %v1560_v19, %v2595_v49  ;;  %v4714_v17 = vld [vmem:[#allocation13_spill] sm:$0xff]  ;;  %v2914_v55 = vld [vmem:[#allocation2 + $0xf0] sm:$0xff] }
 0x137   : > { %2887 = vrot.lane.b32.xlu0 %v4711_v3, %s2987_s28  ;;  %v2603_v16 = vpop.permute.xlu1 %2602  ;;  %v2315_v18 = vunpack.i.h.bf16 %v4713_v24  ;;  %v2314_v37 = vunpack.i.l.bf16 %v4713_v24  ;;  %v2390_v51 = vunpack.i.h.bf16 %v4714_v17  ;;  %v1396_v44 = vsel %vm197_vm0, %v2914_v55, %v2309_v57  ;;  %v4715_v3 = vld [vmem:[#allocation14_spill] sm:$0xff] }
 0x138   : > { %v2605_v52 = vunpack.i.h.bf16 %v2603_v16  ;;  %v2604_v58 = vunpack.i.l.bf16 %v2603_v16  ;;  %v1607_v5 = vsel %vm1606_vm11, %v1574_v43, %v2599_v46  ;;  %v1608_v47 = vsel %vm1606_vm11, %v1575_v38, %v2600_v33  ;;  %v2913_v46 = vld [vmem:[#allocation2 + $0xf8] sm:$0xff]  ;;  %v2915_v49 = vld [vmem:[#allocation2 + $0x110] sm:$0xff] }
 0x139   : > { %v2608_v59 = vpop.permute.xlu0 %2607  ;;  %2892 = vrot.lane.b32.xlu1 %v2891_v41, %s2987_s28  ;;  %v1639_v21 = vpack.c.bf16 %v1608_v47, %v1607_v5  ;;  %v2389_v33 = vunpack.i.l.bf16 %v4714_v17  ;;  %v1397_v43 = vsel %vm197_vm0, %v2913_v46, %v2310_v2  ;;  %v2395_v16 = vunpack.i.h.bf16 %v4715_v3  ;;  %s2923_s28 = scalar_lea.vmem %s2922_s27, 8192 }
 0x13a   : > { %v2610_v54 = vunpack.i.h.bf16 %v2608_v59  ;;  %v2609_v39 = vunpack.i.l.bf16 %v2608_v59  ;;  %v1623_v29 = vsel %vm1606_vm11, %v1590_v45, %v2604_v58  ;;  %v1624_v13 = vsel %vm1606_vm11, %v1591_v14, %v2605_v52  ;;  %v2916_v59 = vld [vmem:[#allocation2 + $0x108] sm:$0xff]  ;;  %p2925_p1 = scmp.lt.s32.totalorder %s2923_s28, %s2917_s22 }
 0x13b   : > { %2167 = vmatprep.mubr.msk.bf16.mxu0 %vm1675_vm12, %v1639_v21  ;;  %v2613_v23 = vpop.permute.xlu1 %2612  ;;  %v1647_v27 = vpack.c.bf16 %v1624_v13, %v1623_v29  ;;  %v2394_v38 = vunpack.i.l.bf16 %v4715_v3  ;;  %v2470_v52 = vunpack.i.h.bf16 %v3922_v62  ;;  %v2469_v58 = vunpack.i.l.bf16 %v3922_v62 }
 0x13c   : > { %v1609_v41 = vsel %vm1606_vm11, %v1576_v26, %v2609_v39  ;;  %v1610_v20 = vsel %vm1606_vm11, %v1577_v4, %v2610_v54  ;;  %v2615_v9 = vunpack.i.h.bf16 %v2613_v23  ;;  %v2614_v22 = vunpack.i.l.bf16 %v2613_v23  ;;  %p2926_p2 = por %p2925_p1, %p2924_p0 }
 0x13d   : > { %v1640_v34 = vpack.c.bf16 %v1610_v20, %v1609_v41  ;;  %v2618_v10 = vpop.permute.xlu0 %2617  ;;  %2183 = vmatprep.mubr.msk.bf16.mxu1 %vm1675_vm12, %v1647_v27  ;;  %v2475_v5 = vunpack.i.h.bf16 %v3934_v42  ;;  %v2474_v47 = vunpack.i.l.bf16 %v3934_v42  ;;  %v1399_v63 = vsel %vm197_vm0, %v2915_v49, %v2315_v18 }
 0x13e   : > { %v1625_v28 = vsel %vm1606_vm11, %v1592_v0, %v2614_v22  ;;  %v1626_v35 = vsel %vm1606_vm11, %v1593_v12, %v2615_v9  ;;  %v1398_v21 = vsel %vm197_vm0, %v2916_v59, %v2314_v37  ;;  %v2620_v14 = vunpack.i.h.bf16 %v2618_v10  ;;  %p2927_p3 = pnand %p2926_p2, %p2920_p13 }
 0x13f   : > { %v1648_v32 = vpack.c.bf16 %v1626_v35, %v1625_v28  ;;  %2168 = vmatmul.mubr.msk.bf16.vlgmr.msra.gmra.mxu0 %vm1675_vm12, %v1640_v34  ;;  %v2623_v6 = vpop.permute.xlu1 %2622  ;;  %v2619_v54 = vunpack.i.l.bf16 %v2618_v10  ;;  %v1429_v29 = vsel %vm1408_vm5, %v1396_v44, %v2389_v33  ;;  %v1430_v13 = vsel %vm1408_vm5, %v1397_v43, %v2390_v51 }
 0x140   : > { %v2625_v19 = vunpack.i.h.bf16 %v2623_v6  ;;  %v2624_v26 = vunpack.i.l.bf16 %v2623_v6  ;;  %v1432_v62 = vsel %vm1408_vm5, %v1399_v63, %v2395_v16  ;;  %v1431_v4 = vsel %vm1408_vm5, %v1398_v21, %v2394_v38 }
 0x141   : > { %v2628_v30 = vpop.permute.xlu0 %2627  ;;  %2184 = vmatmul.mubr.msk.bf16.vlgmr.msra.gmra.mxu1 %vm1675_vm12, %v1648_v32  ;;  %v1462_v41 = vsel %vm1441_vm6, %v1429_v29, %v2469_v58  ;;  %v1463_v20 = vsel %vm1441_vm6, %v1430_v13, %v2470_v52  ;;  %v1464_v9 = vsel %vm1441_vm6, %v1431_v4, %v2474_v47  ;;  %v1465_v22 = vsel %vm1441_vm6, %v1432_v62, %v2475_v5 }
 0x142   : > { %v2630_v42 = vunpack.i.h.bf16 %v2628_v30  ;;  %v2629_v23 = vunpack.i.l.bf16 %v2628_v30  ;;  %v1495_v0 = vsel %vm1474_vm7, %v1462_v41, %v2619_v54  ;;  %v1496_v12 = vsel %vm1474_vm7, %v1463_v20, %v2620_v14 }
 0x143   : > { %v2633_v40 = vpop.permute.xlu1 %2632  ;;  %v1497_v35 = vsel %vm1474_vm7, %v1464_v9, %v2624_v26  ;;  %v1498_v32 = vsel %vm1474_vm7, %v1465_v22, %v2625_v19 }
 0x144   : > { %v2635_v34 = vunpack.i.h.bf16 %v2633_v40  ;;  %v2634_v10 = vunpack.i.l.bf16 %v2633_v40  ;;  %v1512_v7 = vsel %vm1507_vm8, %v4024_v53, %v2629_v23  ;;  %v1513_v2 = vsel %vm1507_vm8, %v4027_v36, %v2630_v42 }
 0x145   : > { %v4250_v11 = vpop.permute.xlu0 %2637 }
 0x146   : > { %v2640_v6 = vunpack.i.h.bf16 %v4250_v11  ;;  %v2639_v30 = vunpack.i.l.bf16 %v4250_v11  ;;  %v1528_v33 = vsel %vm1507_vm8, %v1495_v0, %v2634_v10  ;;  %v1529_v11 = vsel %vm1507_vm8, %v1496_v12, %v2635_v34 }
 0x147   : > { %v4254_v1 = vpop.permute.xlu1 %2642 }
 0x148   : > { %v2645_v57 = vunpack.i.h.bf16 %v4254_v1  ;;  %v2644_v24 = vunpack.i.l.bf16 %v4254_v1  ;;  %v1515_v36 = vsel %vm1507_vm8, %v4040_v60, %v2640_v6  ;;  %v1514_v1 = vsel %vm1507_vm8, %v4037_v61, %v2639_v30 }
 0x149   : > { %v4258_v50 = vpop.permute.xlu0 %2647 }
 0x14a   : > { %v2650_v18 = vunpack.i.h.bf16 %v4258_v50  ;;  %v2649_v37 = vunpack.i.l.bf16 %v4258_v50  ;;  %v1530_v50 = vsel %vm1507_vm8, %v1497_v35, %v2644_v24  ;;  %v1531_v3 = vsel %vm1507_vm8, %v1498_v32, %v2645_v57 }
 0x14b   : > { %v2653_v45 = vpop.permute.xlu1 %2652 }
 0x14c   : > { %v2655_v17 = vunpack.i.h.bf16 %v2653_v45  ;;  %v2654_v51 = vunpack.i.l.bf16 %v2653_v45  ;;  %v1545_v52 = vsel %vm1540_vm9, %v1512_v7, %v2649_v37  ;;  %v1546_v58 = vsel %vm1540_vm9, %v1513_v2, %v2650_v18 }
 0x14d   : > { %v2658_v39 = vpop.permute.xlu0 %2657 }
 0x14e   : > { %v2660_v46 = vunpack.i.h.bf16 %v2658_v39  ;;  %v2659_v53 = vunpack.i.l.bf16 %v2658_v39  ;;  %v1561_v5 = vsel %vm1540_vm9, %v1528_v33, %v2654_v51  ;;  %v1562_v60 = vsel %vm1540_vm9, %v1529_v11, %v2655_v17 }
 0x14f   : > { %v4276_v27 = vpop.permute.xlu1 %2662 }
 0x150   : > { %v2664_v55 = vunpack.i.l.bf16 %v4276_v27  ;;  %v1547_v61 = vsel %vm1540_vm9, %v1514_v1, %v2659_v53  ;;  %v1548_v47 = vsel %vm1540_vm9, %v1515_v36, %v2660_v46  ;;  %v2665_v49 = vunpack.i.h.bf16 %v4276_v27 }
 0x151   : > { %v2668_v28 = vpop.permute.xlu0 %2667 }
 0x152   : > { %v2669_v44 = vunpack.i.l.bf16 %v2668_v28  ;;  %v2670_v16 = vunpack.i.h.bf16 %v2668_v28  ;;  %v1563_v21 = vsel %vm1540_vm9, %v1530_v50, %v2664_v55  ;;  %v1564_v35 = vsel %vm1540_vm9, %v1531_v3, %v2665_v49 }
 0x153   : > { %v2673_v40 = vpop.permute.xlu1 %2672 }
 0x154   : > { %v2674_v38 = vunpack.i.l.bf16 %v2673_v40  ;;  %v2675_v63 = vunpack.i.h.bf16 %v2673_v40  ;;  %v1578_v14 = vsel %vm1573_vm10, %v1545_v52, %v2669_v44  ;;  %v1579_v29 = vsel %vm1573_vm10, %v1546_v58, %v2670_v16 }
 0x155   : > { %v2678_v43 = vpop.permute.xlu0 %2677 }
 0x156   : > { %v1594_v13 = vsel %vm1573_vm10, %v1561_v5, %v2674_v38  ;;  %v2680_v19 = vunpack.i.h.bf16 %v2678_v43  ;;  %v2679_v26 = vunpack.i.l.bf16 %v2678_v43  ;;  %v1595_v41 = vsel %vm1573_vm10, %v1562_v60, %v2675_v63 }
 0x157   : > { %v2683_v45 = vpop.permute.xlu1 %2682 }
 0x158   : > { %v2685_v20 = vunpack.i.h.bf16 %v2683_v45  ;;  %v2684_v9 = vunpack.i.l.bf16 %v2683_v45  ;;  %v1580_v32 = vsel %vm1573_vm10, %v1547_v61, %v2679_v26  ;;  %v1581_v6 = vsel %vm1573_vm10, %v1548_v47, %v2680_v19 }
 0x159   : > { %v2688_v59 = vpop.permute.xlu0 %2687 }
 0x15a   : > { %v2690_v54 = vunpack.i.h.bf16 %v2688_v59  ;;  %v2689_v39 = vunpack.i.l.bf16 %v2688_v59  ;;  %v1596_v18 = vsel %vm1573_vm10, %v1563_v21, %v2684_v9  ;;  %v1597_v37 = vsel %vm1573_vm10, %v1564_v35, %v2685_v20  ;;  %v4716_v20 = vld [vmem:[#allocation26_spill] sm:$0xff]  ;;  %v4717_v9 = vld [vmem:[#allocation16_spill] sm:$0xff] }
 0x15b   : > { %v2693_v62 = vpop.permute.xlu1 %2692 }
 0x15c   : > { %v1611_v4 = vsel %vm1606_vm11, %v1578_v14, %v2689_v39  ;;  %v1612_v42 = vsel %vm1606_vm11, %v1579_v29, %v2690_v54  ;;  %v2695_v23 = vunpack.i.h.bf16 %v2693_v62  ;;  %v2694_v27 = vunpack.i.l.bf16 %v2693_v62 }
 0x15d   : > { %v1641_v22 = vpack.c.bf16 %v1612_v42, %v1611_v4  ;;  %v2698_v0 = vpop.permute.xlu0 %2697 }
 0x15e   : > { %v1627_v12 = vsel %vm1606_vm11, %v1594_v13, %v2694_v27  ;;  %v1628_v34 = vsel %vm1606_vm11, %v1595_v41, %v2695_v23  ;;  %v2700_v10 = vunpack.i.h.bf16 %v2698_v0  ;;  %v2699_v28 = vunpack.i.l.bf16 %v2698_v0 }
 0x15f   : > { %v1649_v30 = vpack.c.bf16 %v1628_v34, %v1627_v12  ;;  %2171 = vmatprep.mubr.msk.bf16.mxu0 %vm1675_vm12, %v1641_v22  ;;  %v2703_v7 = vpop.permute.xlu1 %2702 }
 0x160   : > { %v1613_v2 = vsel %vm1606_vm11, %v1580_v32, %v2699_v28  ;;  %v1614_v57 = vsel %vm1606_vm11, %v1581_v6, %v2700_v10  ;;  %v2705_v24 = vunpack.i.h.bf16 %v2703_v7  ;;  %v2704_v40 = vunpack.i.l.bf16 %v2703_v7 }
 0x161   : > { %v1642_v17 = vpack.c.bf16 %v1614_v57, %v1613_v2  ;;  %v2708_v51 = vpop.permute.xlu0 %2707  ;;  %2187 = vmatprep.mubr.msk.bf16.mxu1 %vm1675_vm12, %v1649_v30 }
 0x162   : > { %v1629_v33 = vsel %vm1606_vm11, %v1596_v18, %v2704_v40  ;;  %v1630_v11 = vsel %vm1606_vm11, %v1597_v37, %v2705_v24  ;;  %v2710_v3 = vunpack.i.h.bf16 %v2708_v51  ;;  %v2709_v16 = vunpack.i.l.bf16 %v2708_v51 }
 0x163   : > { %v1650_v46 = vpack.c.bf16 %v1630_v11, %v1629_v33  ;;  %2172 = vmatmul.mubr.msk.bf16.gmra.mxu0 %vm1675_vm12, %v1642_v17  ;;  %v2713_v53 = vpop.permute.xlu1 %2712 }
 0x164   : > { %v2715_v45 = vunpack.i.h.bf16 %v2713_v53  ;;  %v2714_v52 = vunpack.i.l.bf16 %v2713_v53  ;;  %v1499_v61 = vsel %vm1474_vm7, %v3953_v25, %v2709_v16  ;;  %v1500_v47 = vsel %vm1474_vm7, %v3956_v8, %v2710_v3 }
 0x165   : > { %v2718_v43 = vpop.permute.xlu0 %2717  ;;  %2188 = vmatmul.mubr.msk.bf16.gmra.mxu1 %vm1675_vm12, %v1650_v46 }
 0x166   : > { %v2720_v58 = vunpack.i.h.bf16 %v2718_v43  ;;  %v2719_v5 = vunpack.i.l.bf16 %v2718_v43  ;;  %v1501_v21 = vsel %vm1474_vm7, %v3963_v48, %v2714_v52  ;;  %v1502_v14 = vsel %vm1474_vm7, %v3966_v56, %v2715_v45 }
 0x167   : > { %v2723_v36 = vpop.permute.xlu1 %2722 }
 0x168   : > { %v2725_v49 = vunpack.i.h.bf16 %v2723_v36  ;;  %v2724_v63 = vunpack.i.l.bf16 %v2723_v36  ;;  %v1516_v29 = vsel %vm1507_vm8, %v4047_v15, %v2719_v5  ;;  %v1517_v25 = vsel %vm1507_vm8, %v4051_v31, %v2720_v58 }
 0x169   : > { %v2728_v1 = vpop.permute.xlu0 %2727 }
 0x16a   : > { %v2730_v54 = vunpack.i.h.bf16 %v2728_v1  ;;  %v2729_v39 = vunpack.i.l.bf16 %v2728_v1  ;;  %v1532_v48 = vsel %vm1507_vm8, %v1499_v61, %v2724_v63  ;;  %v1533_v23 = vsel %vm1507_vm8, %v1500_v47, %v2725_v49 }
 0x16b   : > { %v2733_v55 = vpop.permute.xlu1 %2732 }
 0x16c   : > { %v2735_v13 = vunpack.i.h.bf16 %v2733_v55  ;;  %v2734_v19 = vunpack.i.l.bf16 %v2733_v55  ;;  %v1519_v15 = vsel %vm1507_vm8, %v4716_v20, %v2730_v54  ;;  %v1518_v31 = vsel %vm1507_vm8, %v4717_v9, %v2729_v39 }
 0x16d   : > { %v2738_v44 = vpop.permute.xlu0 %2737 }
 0x16e   : > { %v2740_v26 = vunpack.i.h.bf16 %v2738_v44  ;;  %v2739_v62 = vunpack.i.l.bf16 %v2738_v44  ;;  %v1534_v12 = vsel %vm1507_vm8, %v1501_v21, %v2734_v19  ;;  %v1535_v34 = vsel %vm1507_vm8, %v1502_v14, %v2735_v13 }
 0x16f   : > { %v2743_v50 = vpop.permute.xlu1 %2742 }
 0x170   : > { %v2745_v4 = vunpack.i.h.bf16 %v2743_v50  ;;  %v2744_v42 = vunpack.i.l.bf16 %v2743_v50  ;;  %v1549_v32 = vsel %vm1540_vm9, %v1516_v29, %v2739_v62  ;;  %v1550_v6 = vsel %vm1540_vm9, %v1517_v25, %v2740_v26 }
 0x171   : > { %v2748_v38 = vpop.permute.xlu0 %2747 }
 0x172   : > { %v2750_v56 = vunpack.i.h.bf16 %v2748_v38  ;;  %v2749_v27 = vunpack.i.l.bf16 %v2748_v38  ;;  %v1565_v30 = vsel %vm1540_vm9, %v1532_v48, %v2744_v42  ;;  %v1566_v7 = vsel %vm1540_vm9, %v1533_v23, %v2745_v4 }
 0x173   : > { %v4334_v60 = vpop.permute.xlu1 %2752 }
 0x174   : > { %v2754_v22 = vunpack.i.l.bf16 %v4334_v60  ;;  %v1551_v2 = vsel %vm1540_vm9, %v1518_v31, %v2749_v27  ;;  %v1552_v57 = vsel %vm1540_vm9, %v1519_v15, %v2750_v56  ;;  %v2755_v24 = vunpack.i.h.bf16 %v4334_v60 }
 0x175   : > { %v2758_v59 = vpop.permute.xlu0 %2757 }
 0x176   : > { %v2759_v0 = vunpack.i.l.bf16 %v2758_v59  ;;  %v2760_v10 = vunpack.i.h.bf16 %v2758_v59  ;;  %v1567_v37 = vsel %vm1540_vm9, %v1534_v12, %v2754_v22  ;;  %v1568_v47 = vsel %vm1540_vm9, %v1535_v34, %v2755_v24  ;;  %v4719_v24 = vld [vmem:[#allocation19_spill] sm:$0xff] }
 0x177   : > { %v2763_v8 = vpop.permute.xlu1 %2762 }
 0x178   : > { %v2764_v28 = vunpack.i.l.bf16 %v2763_v8  ;;  %v2765_v40 = vunpack.i.h.bf16 %v2763_v8  ;;  %v1582_v17 = vsel %vm1573_vm10, %v1549_v32, %v2759_v0  ;;  %v1583_v11 = vsel %vm1573_vm10, %v1550_v6, %v2760_v10 }
 0x179   : > { %v2768_v41 = vpop.permute.xlu0 %2767 }
 0x17a   : > { %v1598_v46 = vsel %vm1573_vm10, %v1565_v30, %v2764_v28  ;;  %v2770_v53 = vunpack.i.h.bf16 %v2768_v41  ;;  %v2769_v43 = vunpack.i.l.bf16 %v2768_v41  ;;  %v1599_v3 = vsel %vm1573_vm10, %v1566_v7, %v2765_v40 }
 0x17b   : > { %v2773_v35 = vpop.permute.xlu1 %2772 }
 0x17c   : > { %v2775_v16 = vunpack.i.h.bf16 %v2773_v35  ;;  %v2774_v38 = vunpack.i.l.bf16 %v2773_v35  ;;  %v1584_v49 = vsel %vm1573_vm10, %v1551_v2, %v2769_v43  ;;  %v1585_v63 = vsel %vm1573_vm10, %v1552_v57, %v2770_v53  ;;  %v4718_v2 = vld [vmem:[#allocation18_spill] sm:$0xff] }
 0x17d   : > { %v2778_v18 = vpop.permute.xlu0 %2777 }
 0x17e   : > { %v2780_v51 = vunpack.i.h.bf16 %v2778_v18  ;;  %v2779_v33 = vunpack.i.l.bf16 %v2778_v18  ;;  %v1600_v25 = vsel %vm1573_vm10, %v1567_v37, %v2774_v38  ;;  %v1601_v13 = vsel %vm1573_vm10, %v1568_v47, %v2775_v16  ;;  %v4720_v18 = vld [vmem:[#allocation15_spill] sm:$0xff] }
 0x17f   : > { %v2783_v36 = vpop.permute.xlu1 %2782 }
 0x180   : > { %v1615_v1 = vsel %vm1606_vm11, %v1582_v17, %v2779_v33  ;;  %v1616_v55 = vsel %vm1606_vm11, %v1583_v11, %v2780_v51  ;;  %v2785_v44 = vunpack.i.h.bf16 %v2783_v36  ;;  %v2784_v50 = vunpack.i.l.bf16 %v2783_v36  ;;  %v4721_v17 = vld [vmem:[#allocation21_spill] sm:$0xff]  ;;  %v4722_v33 = vld [vmem:[#allocation23_spill] sm:$0xff] }
 0x181   : > { %v1643_v45 = vpack.c.bf16 %v1616_v55, %v1615_v1  ;;  %v2788_v52 = vpop.permute.xlu0 %2787  ;;  %v4724_v55 = vld [vmem:[#allocation24_spill] sm:$0xff] }
 0x182   : > { %v1631_v58 = vsel %vm1606_vm11, %v1598_v46, %v2784_v50  ;;  %v1632_v5 = vsel %vm1606_vm11, %v1599_v3, %v2785_v44  ;;  %v2790_v60 = vunpack.i.h.bf16 %v2788_v52  ;;  %v2789_v61 = vunpack.i.l.bf16 %v2788_v52  ;;  %v4723_v46 = vld [vmem:[#allocation20_spill] sm:$0xff]  ;;  %v4725_v50 = vld [vmem:[#allocation25_spill] sm:$0xff] }
 0x183   : > { %v1651_v59 = vpack.c.bf16 %v1632_v5, %v1631_v58  ;;  %2175 = vmatprep.mubr.msk.bf16.mxu0 %vm1675_vm12, %v1643_v45  ;;  %v2793_v21 = vpop.permute.xlu1 %2792 }
 0x184   : > { %v1617_v14 = vsel %vm1606_vm11, %v1584_v49, %v2789_v61  ;;  %v1618_v54 = vsel %vm1606_vm11, %v1585_v63, %v2790_v60  ;;  %v2795_v39 = vunpack.i.h.bf16 %v2793_v21  ;;  %v2794_v29 = vunpack.i.l.bf16 %v2793_v21 }
 0x185   : > { %v1644_v19 = vpack.c.bf16 %v1618_v54, %v1617_v14  ;;  %v2798_v8 = vpop.permute.xlu0 %2797  ;;  %2191 = vmatprep.mubr.msk.bf16.mxu1 %vm1675_vm12, %v1651_v59 }
 0x186   : > { %v1633_v26 = vsel %vm1606_vm11, %v1600_v25, %v2794_v29  ;;  %v1634_v62 = vsel %vm1606_vm11, %v1601_v13, %v2795_v39  ;;  %v2800_v31 = vunpack.i.h.bf16 %v2798_v8  ;;  %v2799_v22 = vunpack.i.l.bf16 %v2798_v8 }
 0x187   : > { %v1652_v4 = vpack.c.bf16 %v1634_v62, %v1633_v26  ;;  %2176 = vmatmul.mubr.msk.bf16.gmra.mxu0 %vm1675_vm12, %v1644_v19  ;;  %v2803_v42 = vpop.permute.xlu1 %2802 }
 0x188   : > { %v2805_v0 = vunpack.i.h.bf16 %v2803_v42  ;;  %v2804_v12 = vunpack.i.l.bf16 %v2803_v42  ;;  %v1487_v57 = vsel %vm1474_vm7, %v4718_v2, %v2799_v22  ;;  %v1488_v40 = vsel %vm1474_vm7, %v4719_v24, %v2800_v31 }
 0x189   : > { %v2808_v48 = vpop.permute.xlu0 %2807  ;;  %2192 = vmatmul.mubr.msk.bf16.gmra.mxu1 %vm1675_vm12, %v1652_v4 }
 0x18a   : > { %v2810_v34 = vunpack.i.h.bf16 %v2808_v48  ;;  %v2809_v10 = vunpack.i.l.bf16 %v2808_v48  ;;  %v1503_v37 = vsel %vm1474_vm7, %v4720_v18, %v2804_v12  ;;  %v1504_v51 = vsel %vm1474_vm7, %v4721_v17, %v2805_v0 }
 0x18b   : > { %v2813_v23 = vpop.permute.xlu1 %2812 }
 0x18c   : > { %v2815_v35 = vunpack.i.h.bf16 %v2813_v23  ;;  %v2814_v32 = vunpack.i.l.bf16 %v2813_v23  ;;  %v1490_v11 = vsel %vm1474_vm7, %v4722_v33, %v2810_v34  ;;  %v1489_v53 = vsel %vm1474_vm7, %v4723_v46, %v2809_v10 }
 0x18d   : > { %v2818_v56 = vpop.permute.xlu0 %2817 }
 0x18e   : > { %v2820_v6 = vunpack.i.h.bf16 %v2818_v56  ;;  %v2819_v30 = vunpack.i.l.bf16 %v2818_v56  ;;  %v1505_v44 = vsel %vm1474_vm7, %v4724_v55, %v2814_v32  ;;  %v1506_v3 = vsel %vm1474_vm7, %v4725_v50, %v2815_v35 }
 0x18f   : > { %v2823_v27 = vpop.permute.xlu1 %2822 }
 0x190   : > { %v2825_v43 = vunpack.i.h.bf16 %v2823_v27  ;;  %v2824_v36 = vunpack.i.l.bf16 %v2823_v27  ;;  %v1520_v45 = vsel %vm1507_vm8, %v1487_v57, %v2819_v30  ;;  %v1521_v52 = vsel %vm1507_vm8, %v1488_v40, %v2820_v6 }
 0x191   : > { %v2828_v41 = vpop.permute.xlu0 %2827 }
 0x192   : > { %v2830_v16 = vunpack.i.h.bf16 %v2828_v41  ;;  %v2829_v38 = vunpack.i.l.bf16 %v2828_v41  ;;  %v1536_v59 = vsel %vm1507_vm8, %v1503_v37, %v2824_v36  ;;  %v1537_v21 = vsel %vm1507_vm8, %v1504_v51, %v2825_v43 }
 0x193   : > { %v2833_v20 = vpop.permute.xlu1 %2832 }
 0x194   : > { %v2835_v58 = vunpack.i.h.bf16 %v2833_v20  ;;  %v2834_v5 = vunpack.i.l.bf16 %v2833_v20  ;;  %v1522_v29 = vsel %vm1507_vm8, %v1489_v53, %v2829_v38  ;;  %v1523_v25 = vsel %vm1507_vm8, %v1490_v11, %v2830_v16 }
 0x195   : > { %v2838_v15 = vpop.permute.xlu0 %2837 }
 0x196   : > { %v2840_v61 = vunpack.i.h.bf16 %v2838_v15  ;;  %v2839_v47 = vunpack.i.l.bf16 %v2838_v15  ;;  %v1538_v8 = vsel %vm1507_vm8, %v1505_v44, %v2834_v5  ;;  %v1539_v26 = vsel %vm1507_vm8, %v1506_v3, %v2835_v58 }
 0x197   : > { %v2843_v9 = vpop.permute.xlu1 %2842 }
 0x198   : > { %v2845_v49 = vunpack.i.h.bf16 %v2843_v9  ;;  %v2844_v63 = vunpack.i.l.bf16 %v2843_v9  ;;  %v1553_v48 = vsel %vm1540_vm9, %v1520_v45, %v2839_v47  ;;  %v1554_v23 = vsel %vm1540_vm9, %v1521_v52, %v2840_v61  ;;  %v4446_v61 = vld [vmem:[%s4607_s2] ss:$0 sm:$0xff] }
 0x199   : > { %v2848_v28 = vpop.permute.xlu0 %2847 }
 0x19a   : > { %v2850_v14 = vunpack.i.h.bf16 %v2848_v28  ;;  %v2849_v54 = vunpack.i.l.bf16 %v2848_v28  ;;  %v1569_v56 = vsel %vm1540_vm9, %v1536_v59, %v2844_v63  ;;  %v1570_v27 = vsel %vm1540_vm9, %v1537_v21, %v2845_v49  ;;  %v4451_v49 = vld [vmem:[%s4608_s3] ss:$0 sm:$0xff] }
 0x19b   : > { %v4386_v7 = vpop.permute.xlu1 %2852 }
 0x19c   : > { %v2854_v13 = vunpack.i.l.bf16 %v4386_v7  ;;  %v1555_v41 = vsel %vm1540_vm9, %v1522_v29, %v2849_v54  ;;  %v1556_v20 = vsel %vm1540_vm9, %v1523_v25, %v2850_v14  ;;  %v2855_v15 = vunpack.i.h.bf16 %v4386_v7 }
 0x19d   : > { %v2858_v1 = vpop.permute.xlu0 %2857 }
 0x19e   : > { %v2859_v19 = vunpack.i.l.bf16 %v2858_v1  ;;  %v2860_v62 = vunpack.i.h.bf16 %v2858_v1  ;;  %v1571_v22 = vsel %vm1540_vm9, %v1538_v8, %v2854_v13  ;;  %v1572_v53 = vsel %vm1540_vm9, %v1539_v26, %v2855_v15 }
 0x19f   : > { %v2863_v60 = vpop.permute.xlu1 %2862 }
 0x1a0   : > { %v2864_v4 = vunpack.i.l.bf16 %v2863_v60  ;;  %v2865_v9 = vunpack.i.h.bf16 %v2863_v60  ;;  %v1586_v0 = vsel %vm1573_vm10, %v1553_v48, %v2859_v19  ;;  %v1587_v10 = vsel %vm1573_vm10, %v1554_v23, %v2860_v62 }
 0x1a1   : > { %v2868_v39 = vpop.permute.xlu0 %2867 }
 0x1a2   : > { %v1602_v28 = vsel %vm1573_vm10, %v1569_v56, %v2864_v4  ;;  %v2870_v35 = vunpack.i.h.bf16 %v2868_v39  ;;  %v2869_v32 = vunpack.i.l.bf16 %v2868_v39  ;;  %v1603_v24 = vsel %vm1573_vm10, %v1570_v27, %v2865_v9 }
 0x1a3   : > { %v2873_v42 = vpop.permute.xlu1 %2872 }
 0x1a4   : > { %v2875_v40 = vunpack.i.h.bf16 %v2873_v42  ;;  %v2874_v18 = vunpack.i.l.bf16 %v2873_v42  ;;  %v1588_v43 = vsel %vm1573_vm10, %v1555_v41, %v2869_v32  ;;  %v1589_v36 = vsel %vm1573_vm10, %v1556_v20, %v2870_v35 }
 0x1a5   : > { %v2878_v31 = vpop.permute.xlu0 %2877 }
 0x1a6   : > { %v2880_v12 = vunpack.i.h.bf16 %v2878_v31  ;;  %v2879_v34 = vunpack.i.l.bf16 %v2878_v31  ;;  %v1604_v38 = vsel %vm1573_vm10, %v1571_v22, %v2874_v18  ;;  %v1605_v45 = vsel %vm1573_vm10, %v1572_v53, %v2875_v40 }
 0x1a7   : > { %v2883_v6 = vpop.permute.xlu1 %2882 }
 0x1a8   : > { %v1619_v30 = vsel %vm1606_vm11, %v1586_v0, %v2879_v34  ;;  %v1620_v2 = vsel %vm1606_vm11, %v1587_v10, %v2880_v12  ;;  %v2885_v7 = vunpack.i.h.bf16 %v2883_v6  ;;  %v2884_v57 = vunpack.i.l.bf16 %v2883_v6 }
 0x1a9   : > { %v1645_v37 = vpack.c.bf16 %v1620_v2, %v1619_v30  ;;  %v2888_v17 = vpop.permute.xlu0 %2887 }
 0x1aa   : > { %v1635_v51 = vsel %vm1606_vm11, %v1602_v28, %v2884_v57  ;;  %v1636_v33 = vsel %vm1606_vm11, %v1603_v24, %v2885_v7  ;;  %v2890_v11 = vunpack.i.h.bf16 %v2888_v17  ;;  %v2889_v46 = vunpack.i.l.bf16 %v2888_v17 }
 0x1ab   : > { %v1653_v1 = vpack.c.bf16 %v1636_v33, %v1635_v51  ;;  %2179 = vmatprep.mubr.msk.bf16.mxu0 %vm1675_vm12, %v1645_v37  ;;  %v2893_v55 = vpop.permute.xlu1 %2892 }
 0x1ac   : > { %v1621_v44 = vsel %vm1606_vm11, %v1588_v43, %v2889_v46  ;;  %v1622_v50 = vsel %vm1606_vm11, %v1589_v36, %v2890_v11  ;;  %v2895_v3 = vunpack.i.h.bf16 %v2893_v55  ;;  %v2894_v16 = vunpack.i.l.bf16 %v2893_v55 }
 0x1ad   : > { %v1646_v52 = vpack.c.bf16 %v1622_v50, %v1621_v44  ;;  %2195 = vmatprep.mubr.msk.bf16.mxu1 %vm1675_vm12, %v1653_v1 }
 0x1ae   : > { %v1637_v58 = vsel %vm1606_vm11, %v1604_v38, %v2894_v16  ;;  %v1638_v5 = vsel %vm1606_vm11, %v1605_v45, %v2895_v3 }
 0x1af   : > { %v1654_v60 = vpack.c.bf16 %v1638_v5, %v1637_v58  ;;  %2180 = vmatmul.mubr.msk.bf16.gmra.mxu0 %vm1675_vm12, %v1646_v52 }
 0x1b1   : > { %2196 = vmatmul.mubr.msk.bf16.gmra.mxu1 %vm1675_vm12, %v1654_v60 }
 0x1ff   : > { %v2169_v47 = vpop.f32.mrf.mxu0 }
 0x200   : > { %v1898_v63 = vmul.f32 %v2169_v47, %v4446_v61 }
 0x201   : > { %v1762_v59 = vpop.f32.mrf.mxu0  ;;  %v2185_v21 = vpop.f32.mrf.mxu1 }
 0x202   : > { %v1937_v14 = vadd.f32 %v4451_v49, %v1898_v63  ;;  %v1896_v54 = vmul.f32 %v4446_v61, %v1762_v59  ;;  %v1914_v39 = vmul.f32 %v2185_v21, %v4446_v61 }
 0x203   : > { %v2170_v29 = vpop.f32.mrf.mxu0  ;;  %v1826_v25 = vpop.f32.mrf.mxu1 }
 0x204   : > { %v1969_v13 = vmax.f32 %v1937_v14, 0.0  ;;  %v1935_v19 = vadd.f32 %v4451_v49, %v1896_v54  ;;  %v1899_v8 = vmul.f32 %v2170_v29, %v4446_v61  ;;  %v1953_v26 = vadd.f32 %v4451_v49, %v1914_v39 }
 0x205   : > { %v1765_v62 = vpop.f32.mrf.mxu0  ;;  %v1912_v4 = vmul.f32 %v4446_v61, %v1826_v25  ;;  %v2186_v42 = vpop.f32.mrf.mxu1 }
 0x206   : > { %2001 = vst [vmem:[%s4463_s10 + $0x10] sm:$0xff] %v1969_v13  ;;  %v1967_v48 = vmax.f32 %v1935_v19, 0.0  ;;  %v1938_v23 = vadd.f32 %v4451_v49, %v1899_v8  ;;  %v1985_v56 = vmax.f32 %v1953_v26, 0.0  ;;  %v1897_v27 = vmul.f32 %v4446_v61, %v1765_v62 }
 0x207   : > { %v1951_v41 = vadd.f32 %v4451_v49, %v1912_v4  ;;  %v1915_v20 = vmul.f32 %v2186_v42, %v4446_v61  ;;  %v1829_v15 = vpop.f32.mrf.mxu1 }
 0x208   : > { %1999 = vst [vmem:[%s4463_s10] sm:$0xff] %v1967_v48  ;;  %v1970_v9 = vmax.f32 %v1938_v23, 0.0  ;;  %2017 = vst [vmem:[%s4463_s10 + $0x90] sm:$0xff] %v1985_v56  ;;  %v1936_v31 = vadd.f32 %v4451_v49, %v1897_v27  ;;  %v1913_v22 = vmul.f32 %v4446_v61, %v1829_v15 }
 0x209   : > { %v1983_v0 = vmax.f32 %v1951_v41, 0.0  ;;  %v1954_v12 = vadd.f32 %v4451_v49, %v1915_v20 }
 0x20a   : > { %2002 = vst [vmem:[%s4463_s10 + $0x18] sm:$0xff] %v1970_v9  ;;  %v1968_v34 = vmax.f32 %v1936_v31, 0.0  ;;  %v1952_v10 = vadd.f32 %v4451_v49, %v1913_v22 }
 0x20b   : > { %2015 = vst [vmem:[%s4463_s10 + $0x80] sm:$0xff] %v1983_v0  ;;  %v1986_v28 = vmax.f32 %v1954_v12, 0.0 }
 0x20c   : > { %2000 = vst [vmem:[%s4463_s10 + $0x8] sm:$0xff] %v1968_v34  ;;  %v1984_v35 = vmax.f32 %v1952_v10, 0.0 }
 0x20d   : > { %2018 = vst [vmem:[%s4463_s10 + $0x98] sm:$0xff] %v1986_v28 }
 0x20e   : > { %2016 = vst [vmem:[%s4463_s10 + $0x88] sm:$0xff] %v1984_v35 }
 0x223   : > { %v2173_v32 = vpop.f32.mrf.mxu0 }
 0x224   : > { %v1902_v6 = vmul.f32 %v2173_v32, %v4446_v61 }
 0x225   : > { %v1778_v30 = vpop.f32.mrf.mxu0  ;;  %v2189_v2 = vpop.f32.mrf.mxu1 }
 0x226   : > { %v1941_v7 = vadd.f32 %v4451_v49, %v1902_v6  ;;  %v1900_v57 = vmul.f32 %v4446_v61, %v1778_v30  ;;  %v1918_v24 = vmul.f32 %v2189_v2, %v4446_v61 }
 0x227   : > { %v2174_v40 = vpop.f32.mrf.mxu0  ;;  %v1842_v18 = vpop.f32.mrf.mxu1 }
 0x228   : > { %v1973_v37 = vmax.f32 %v1941_v7, 0.0  ;;  %v1939_v17 = vadd.f32 %v4451_v49, %v1900_v57  ;;  %v1903_v51 = vmul.f32 %v2174_v40, %v4446_v61  ;;  %v1957_v33 = vadd.f32 %v4451_v49, %v1918_v24 }
 0x229   : > { %v1781_v11 = vpop.f32.mrf.mxu0  ;;  %v1916_v46 = vmul.f32 %v4446_v61, %v1842_v18  ;;  %v2190_v53 = vpop.f32.mrf.mxu1 }
 0x22a   : > { %2005 = vst [vmem:[%s4463_s10 + $0x30] sm:$0xff] %v1973_v37  ;;  %v1971_v43 = vmax.f32 %v1939_v17, 0.0  ;;  %v1942_v36 = vadd.f32 %v4451_v49, %v1903_v51  ;;  %v1989_v1 = vmax.f32 %v1957_v33, 0.0  ;;  %v1901_v55 = vmul.f32 %v4446_v61, %v1781_v11 }
 0x22b   : > { %v1955_v44 = vadd.f32 %v4451_v49, %v1916_v46  ;;  %v1919_v50 = vmul.f32 %v2190_v53, %v4446_v61  ;;  %v1845_v3 = vpop.f32.mrf.mxu1 }
 0x22c   : > { %2003 = vst [vmem:[%s4463_s10 + $0x20] sm:$0xff] %v1971_v43  ;;  %v1974_v16 = vmax.f32 %v1942_v36, 0.0  ;;  %2021 = vst [vmem:[%s4463_s10 + $0xb0] sm:$0xff] %v1989_v1  ;;  %v1940_v38 = vadd.f32 %v4451_v49, %v1901_v55  ;;  %v1917_v45 = vmul.f32 %v4446_v61, %v1845_v3 }
 0x22d   : > { %v1987_v52 = vmax.f32 %v1955_v44, 0.0  ;;  %v1958_v58 = vadd.f32 %v4451_v49, %v1919_v50 }
 0x22e   : > { %2006 = vst [vmem:[%s4463_s10 + $0x38] sm:$0xff] %v1974_v16  ;;  %v1972_v5 = vmax.f32 %v1940_v38, 0.0  ;;  %v1956_v60 = vadd.f32 %v4451_v49, %v1917_v45 }
 0x22f   : > { %2019 = vst [vmem:[%s4463_s10 + $0xa0] sm:$0xff] %v1987_v52  ;;  %v1990_v47 = vmax.f32 %v1958_v58, 0.0 }
 0x230   : > { %2004 = vst [vmem:[%s4463_s10 + $0x28] sm:$0xff] %v1972_v5  ;;  %v1988_v63 = vmax.f32 %v1956_v60, 0.0 }
 0x231   : > { %2022 = vst [vmem:[%s4463_s10 + $0xb8] sm:$0xff] %v1990_v47 }
 0x232   : > { %2020 = vst [vmem:[%s4463_s10 + $0xa8] sm:$0xff] %v1988_v63 }
 0x247   : > { %v2177_v59 = vpop.f32.mrf.mxu0 }
 0x248   : > { %v1906_v21 = vmul.f32 %v2177_v59, %v4446_v61 }
 0x249   : > { %v1794_v14 = vpop.f32.mrf.mxu0  ;;  %v2193_v54 = vpop.f32.mrf.mxu1 }
 0x24a   : > { %v1945_v39 = vadd.f32 %v4451_v49, %v1906_v21  ;;  %v1904_v29 = vmul.f32 %v4446_v61, %v1794_v14  ;;  %v1922_v25 = vmul.f32 %v2193_v54, %v4446_v61 }
 0x24b   : > { %v2178_v13 = vpop.f32.mrf.mxu0  ;;  %v1858_v19 = vpop.f32.mrf.mxu1 }
 0x24c   : > { %v1977_v8 = vmax.f32 %v1945_v39, 0.0  ;;  %v1943_v26 = vadd.f32 %v4451_v49, %v1904_v29  ;;  %v1907_v62 = vmul.f32 %v2178_v13, %v4446_v61  ;;  %v1961_v4 = vadd.f32 %v4451_v49, %v1922_v25 }
 0x24d   : > { %v1797_v42 = vpop.f32.mrf.mxu0  ;;  %v1920_v48 = vmul.f32 %v4446_v61, %v1858_v19  ;;  %v2194_v23 = vpop.f32.mrf.mxu1 }
 0x24e   : > { %2009 = vst [vmem:[%s4463_s10 + $0x50] sm:$0xff] %v1977_v8  ;;  %v1975_v56 = vmax.f32 %v1943_v26, 0.0  ;;  %v1946_v27 = vadd.f32 %v4451_v49, %v1907_v62  ;;  %v1993_v41 = vmax.f32 %v1961_v4, 0.0  ;;  %v1905_v20 = vmul.f32 %v4446_v61, %v1797_v42 }
 0x24f   : > { %v1959_v15 = vadd.f32 %v4451_v49, %v1920_v48  ;;  %v1923_v9 = vmul.f32 %v2194_v23, %v4446_v61  ;;  %v1861_v31 = vpop.f32.mrf.mxu1 }
 0x250   : > { %2007 = vst [vmem:[%s4463_s10 + $0x40] sm:$0xff] %v1975_v56  ;;  %v1978_v22 = vmax.f32 %v1946_v27, 0.0  ;;  %2025 = vst [vmem:[%s4463_s10 + $0xd0] sm:$0xff] %v1993_v41  ;;  %v1944_v0 = vadd.f32 %v4451_v49, %v1905_v20  ;;  %v1921_v12 = vmul.f32 %v4446_v61, %v1861_v31 }
 0x251   : > { %v1991_v34 = vmax.f32 %v1959_v15, 0.0  ;;  %v1962_v10 = vadd.f32 %v4451_v49, %v1923_v9 }
 0x252   : > { %2010 = vst [vmem:[%s4463_s10 + $0x58] sm:$0xff] %v1978_v22  ;;  %v1976_v28 = vmax.f32 %v1944_v0, 0.0  ;;  %v1960_v35 = vadd.f32 %v4451_v49, %v1921_v12 }
 0x253   : > { %2023 = vst [vmem:[%s4463_s10 + $0xc0] sm:$0xff] %v1991_v34  ;;  %v1994_v32 = vmax.f32 %v1962_v10, 0.0 }
 0x254   : > { %2008 = vst [vmem:[%s4463_s10 + $0x48] sm:$0xff] %v1976_v28  ;;  %v1992_v6 = vmax.f32 %v1960_v35, 0.0 }
 0x255   : > { %2026 = vst [vmem:[%s4463_s10 + $0xd8] sm:$0xff] %v1994_v32 }
 0x256   : > { %2024 = vst [vmem:[%s4463_s10 + $0xc8] sm:$0xff] %v1992_v6 }
 0x26f   : > { %v2181_v30 = vpop.f32.mrf.mxu0 }
 0x270   : > { %v1910_v2 = vmul.f32 %v2181_v30, %v4446_v61 }
 0x271   : > { %v1810_v7 = vpop.f32.mrf.mxu0  ;;  %v2197_v57 = vpop.f32.mrf.mxu1 }
 0x272   : > { %v1949_v24 = vadd.f32 %v4451_v49, %v1910_v2  ;;  %v1908_v40 = vmul.f32 %v4446_v61, %v1810_v7  ;;  %v1926_v18 = vmul.f32 %v2197_v57, %v4446_v61 }
 0x273   : > { %v2182_v37 = vpop.f32.mrf.mxu0  ;;  %v1874_v17 = vpop.f32.mrf.mxu1 }
 0x274   : > { %v1981_v51 = vmax.f32 %v1949_v24, 0.0  ;;  %v1947_v33 = vadd.f32 %v4451_v49, %v1908_v40  ;;  %v1911_v11 = vmul.f32 %v2182_v37, %v4446_v61  ;;  %v1965_v46 = vadd.f32 %v4451_v49, %v1926_v18 }
 0x275   : > { %v1813_v53 = vpop.f32.mrf.mxu0  ;;  %v1924_v43 = vmul.f32 %v4446_v61, %v1874_v17  ;;  %v2198_v36 = vpop.f32.mrf.mxu1 }
 0x276   : > { %2013 = vst [vmem:[%s4463_s10 + $0x70] sm:$0xff] %v1981_v51  ;;  %v1979_v1 = vmax.f32 %v1947_v33, 0.0  ;;  %v1950_v55 = vadd.f32 %v4451_v49, %v1911_v11  ;;  %v1997_v44 = vmax.f32 %v1965_v46, 0.0  ;;  %v1909_v50 = vmul.f32 %v4446_v61, %v1813_v53 }
 0x277   : > { %v1963_v3 = vadd.f32 %v4451_v49, %v1924_v43  ;;  %v1927_v16 = vmul.f32 %v2198_v36, %v4446_v61  ;;  %v1877_v38 = vpop.f32.mrf.mxu1 }
 0x278   : > { %2011 = vst [vmem:[%s4463_s10 + $0x60] sm:$0xff] %v1979_v1  ;;  %v1982_v45 = vmax.f32 %v1950_v55, 0.0  ;;  %2029 = vst [vmem:[%s4463_s10 + $0xf0] sm:$0xff] %v1997_v44  ;;  %v1948_v52 = vadd.f32 %v4451_v49, %v1909_v50  ;;  %v1925_v58 = vmul.f32 %v4446_v61, %v1877_v38 }
 0x279   : > { %v1995_v5 = vmax.f32 %v1963_v3, 0.0  ;;  %v1966_v60 = vadd.f32 %v4451_v49, %v1927_v16 }
 0x27a   : > { %2014 = vst [vmem:[%s4463_s10 + $0x78] sm:$0xff] %v1982_v45  ;;  %v1980_v47 = vmax.f32 %v1948_v52, 0.0  ;;  %v1964_v63 = vadd.f32 %v4451_v49, %v1925_v58 }
 0x27b   : > { %2027 = vst [vmem:[%s4463_s10 + $0xe0] sm:$0xff] %v1995_v5  ;;  %v1998_v59 = vmax.f32 %v1966_v60, 0.0 }
 0x27c   : > { %2012 = vst [vmem:[%s4463_s10 + $0x68] sm:$0xff] %v1980_v47  ;;  %v1996_v61 = vmax.f32 %v1964_v63, 0.0 }
 0x27d   : > { %2030 = vst [vmem:[%s4463_s10 + $0xf8] sm:$0xff] %v1998_v59 }
 0x27e   : > { %2028 = vst [vmem:[%s4463_s10 + $0xe8] sm:$0xff] %v1996_v61 }
 0x27f   : > { %2930 = shalt.err (!%p2927_p3)
}
 0x280   : > { %s2931_s29 = scalar_lea.hbm %s4555_s20, 4096  ;;  %s2935_s6 = scalar_lea.hbm %s4609_s4, 8192 }
 0x281   : > { %p2932_p4 = scmp.ne.s32.totalorder %s4555_s20, %s2931_s29  ;;  %p2936_p9 = scmp.lt.s32.totalorder %s4555_s20, %s4609_s4 }
 0x282   : > { %p2937_p10 = scmp.lt.s32.totalorder %s2935_s6, %s2931_s29 }
 0x283   : > { %p2933_p7 = pnand %p2932_p4, %p3053_p5 }
 0x284   : > { %p2938_p11 = por %p2937_p10, %p2936_p9 }
 0x285   : > { %p2934_p8 = pneg %p2933_p7 }
 0x287   : > { %p2939_p12 = pnand %p2938_p11, %p2934_p8 }
 0x289   : > { %2942 = shalt.err (!%p2939_p12)
}
 0x28a   : > { %s2989_s10 = smov 128  }
 0x28b   : > { %2207 = dma.vmem_to_hbm [thread:$0]  (%p3053_p5), %s4558_s12, 4096, %s4555_s20, %s4564_s19, %s2989_s10, %s2989_s10, %s2981_s7  }
 0x28c PF: > { %p2213_p13 = scmp.ge.s32.totalorder %s2977_s18, 2  ;;  %s2060_s11 = sand.u32 1, %s2965_s15  }
 0x28d   : > { %s2061_s13 = scalar_lea.sflag [#allocation4], %s2060_s11 }
 0x28e   : > { %p2210_p0 = pnand %p2213_p13, %p3057_p6 }
 0x290   : > { %p2211_p1 = pneg %p2210_p0 }
 0x292   : > { %2960 = dma.done.wait (%p2211_p1), %s2061_s13, 4096  }
 0x293   : > { %2962 = vsyncadd (%p2211_p1), %s2061_s13, 4294963200  ;;  %p14_p2 = scmp.ge.s32.totalorder %s3040_s21, 4   ;;  %s4726_s15 = smov %s2969_s16 }
 0x294   : > { %s4727_s16 = smov %s2973_s17  ;;  %s4728_s17 = smov %s3051_s24 }
 0x295   : > { %s4729_s18 = smov %s3040_s21  ;;  %16 = sbr.rel (!%p14_p2) target bundleno = 3 (0x3), region = 72 }
 0x29a   :  { %2066 = vsyncpa [#allocation4], 1 }
 0x29b   :  { %2068 = vsyncpa [#allocation4 + $0x1], 1 }

</bundles_post_ra>
